<compile_context>
chip_gen: v7x
topology: tpu7x:2x2x1
jax: 0.10.0
libtpu: 0.0.40
codegen_flags: <defaults>
</compile_context>

<pallas_src>
import functools

import jax
import jax.numpy as jnp
from jax.experimental import pallas as pl
from jax.experimental.pallas import tpu as pltpu

NUM_LAYERS = 3


def _decoder_step_kernel(num_layers, n,
                         tok_ref,     # SMEM (n,)        int32   token ids
                         emb_hbm,     # ANY  (v, h)      f32     embedding table (stays in HBM)
                         h0_ref,      # VMEM (L, n, h)   f32     incoming hidden state
                         wih_ref,     # VMEM (L, h, h)   bf16    (in, out) layout
                         whh_ref,     # VMEM (L, h, h)   bf16    (in, out) layout
                         b_ref,       # VMEM (L, 1, h)   f32     b_ih + b_hh (pre-summed)
                         wout_ref,    # VMEM (h, v)      bf16    (in, out) layout
                         bout_ref,    # VMEM (1, v)      f32
                         logits_ref,  # out: (n, v)      f32
                         hnew_ref,    # out: (L, n, h)   f32     (aliases h0's HBM buffer)
                         emb_buf,     # scratch VMEM (n, h) f32
                         emb_sem):    # scratch DMA semaphores (n,)
    # 1) Kick off the embedding-row gather: n tiny HBM->VMEM DMAs. Only the
    #    rows we actually need move; the full (v, h) table never enters VMEM.
    copies = []
    for i in range(n):
        tok = tok_ref[i]
        cp = pltpu.make_async_copy(emb_hbm.at[pl.ds(tok, 1), :],
                                   emb_buf.at[pl.ds(i, 1), :],
                                   emb_sem.at[i])
        cp.start()
        copies.append(cp)

    # 2) While the gather DMAs are in flight, issue the recurrent (W_hh)
    #    contributions for every layer. They depend only on the incoming
    #    hidden state, so they are off the serial x -> tanh -> x critical path
    #    and overlap the embedding DMA latency. The pre-summed bias is folded
    #    in here so the serial chain only does (matmul + add + tanh).
    hh = []
    for l in range(num_layers):
        h_prev = h0_ref[l].astype(jnp.bfloat16)                        # (n, h)
        hh.append(jnp.dot(h_prev, whh_ref[l],
                          preferred_element_type=jnp.float32) + b_ref[l])

    # 3) Wait for the embedding rows, then run the serial tanh chain.
    for cp in copies:
        cp.wait()
    x = emb_buf[...]                                                   # (n, h) f32
    for l in range(num_layers):
        pre = jnp.dot(x.astype(jnp.bfloat16), wih_ref[l],
                      preferred_element_type=jnp.float32) + hh[l]
        x = jnp.tanh(pre)                                              # (n, h) f32
        hnew_ref[l] = x                                                # store as it completes

    # 4) Output projection (lane-dense (n, v) store, v a multiple of 128).
    logits_ref[...] = (jnp.dot(x.astype(jnp.bfloat16), wout_ref[...],
                               preferred_element_type=jnp.float32)
                       + bout_ref[...])


def prepare_decoder_params(params):
    """One-time layout/dtype transforms (run OUTSIDE the decode loop)."""
    return {
        "embedding": params["embedding"],                                        # (v, h) f32, stays in HBM
        "w_ih": jnp.transpose(params["w_ih"], (0, 2, 1)).astype(jnp.bfloat16),   # (L, h, h) (in,out)
        "w_hh": jnp.transpose(params["w_hh"], (0, 2, 1)).astype(jnp.bfloat16),   # (L, h, h) (in,out)
        "b": (params["b_ih"] + params["b_hh"])[:, None, :].astype(jnp.float32),  # (L, 1, h)
        "w_out": params["w_out"].T.astype(jnp.bfloat16),                         # (h, v) (in,out)
        "b_out": params["b_out"][None, :].astype(jnp.float32),                   # (1, v)
    }


def decoder_forward(x_tokens, hidden, prep):
    """x_tokens: (n, 1) int32, hidden: (L, n, h) f32, prep: prepare_decoder_params output.

    Returns (outputs (1, n, v), hidden (L, n, h)) — same as the torch module.
    """
    n = x_tokens.shape[0]
    num_layers, _, h = hidden.shape
    v = prep["w_out"].shape[1]

    vmem = pl.BlockSpec(memory_space=pltpu.MemorySpace.VMEM)
    smem = pl.BlockSpec(memory_space=pltpu.MemorySpace.SMEM)
    hbm = pl.BlockSpec(memory_space=pl.ANY)

    kernel = functools.partial(_decoder_step_kernel, num_layers, n)

    logits, h_new = pl.pallas_call(
        kernel,
        out_shape=(
            jax.ShapeDtypeStruct((n, v), jnp.float32),
            jax.ShapeDtypeStruct((num_layers, n, h), jnp.float32),
        ),
        in_specs=[smem, hbm, vmem, vmem, vmem, vmem, vmem, vmem],
        out_specs=(vmem, vmem),
        scratch_shapes=[
            pltpu.VMEM((n, h), jnp.float32),        # gathered embedding rows
            pltpu.SemaphoreType.DMA((n,)),          # one sem per row DMA
        ],
        input_output_aliases={2: 1},                # hidden (input 2) -> new hidden (output 1)
    )(x_tokens.reshape(n), prep["embedding"], hidden,
      prep["w_ih"], prep["w_hh"], prep["b"], prep["w_out"], prep["b_out"])

    # torch: self.out(output) with output of shape (1, n, h) -> (1, n, v)
    return logits[None, :, :], h_new


def init_params(key, v, h, num_layers):
    ks = jax.random.split(key, 7)
    scale = 1.0 / jnp.sqrt(h)
    return {
        "embedding": jax.random.normal(ks[0], (v, h), jnp.float32),
        "w_ih": jax.random.uniform(ks[1], (num_layers, h, h), jnp.float32, -scale, scale),
        "w_hh": jax.random.uniform(ks[2], (num_layers, h, h), jnp.float32, -scale, scale),
        "b_ih": jax.random.uniform(ks[3], (num_layers, h), jnp.float32, -scale, scale),
        "b_hh": jax.random.uniform(ks[4], (num_layers, h), jnp.float32, -scale, scale),
        "w_out": jax.random.uniform(ks[5], (v, h), jnp.float32, -scale, scale),
        "b_out": jax.random.uniform(ks[6], (v,), jnp.float32, -scale, scale),
    }


def reference_forward_f32(x_tokens, hidden, params):
    """Pure-JAX f32 reference mirroring the torch semantics."""
    x = params["embedding"][x_tokens[:, 0]]                            # (n, h)
    new_hidden = []
    for l in range(hidden.shape[0]):
        pre = (x @ params["w_ih"][l].T + params["b_ih"][l]
               + hidden[l] @ params["w_hh"][l].T + params["b_hh"][l])
        x = jnp.tanh(pre)
        new_hidden.append(x)
    logits = x @ params["w_out"].T + params["b_out"]
    return logits[None, :, :], jnp.stack(new_hidden, axis=0)


def _rt_bf16(a):
    """Round-trip through bf16 (mirrors the kernel's MXU operand precision)."""
    return a.astype(jnp.bfloat16).astype(jnp.float32)


def reference_forward_bf16(x_tokens, hidden, params):
    """Reference with the same bf16 operand rounding as the kernel (f32 accumulate)."""
    x = params["embedding"][x_tokens[:, 0]]
    new_hidden = []
    for l in range(hidden.shape[0]):
        pre = (_rt_bf16(x) @ _rt_bf16(params["w_ih"][l]).T
               + _rt_bf16(hidden[l]) @ _rt_bf16(params["w_hh"][l]).T
               + params["b_ih"][l] + params["b_hh"][l])
        x = jnp.tanh(pre)
        new_hidden.append(x)
    logits = _rt_bf16(x) @ _rt_bf16(params["w_out"]).T + params["b_out"]
    return logits[None, :, :], jnp.stack(new_hidden, axis=0)


if __name__ == "__main__":
    n, h, v = 8, 128, 256
    key = jax.random.PRNGKey(0)
    k_par, k_tok, k_hid = jax.random.split(key, 3)

    params = init_params(k_par, v, h, NUM_LAYERS)
    prep = prepare_decoder_params(params)                  # one-time, outside the decode loop
    x_tokens = jax.random.randint(k_tok, (n, 1), 0, v, dtype=jnp.int32)
    hidden = jax.random.normal(k_hid, (NUM_LAYERS, n, h), jnp.float32)

    # Compute references first: `hidden` is donated to the kernel call below.
    ref_out32, ref_hid32 = reference_forward_f32(x_tokens, hidden, params)
    ref_out16, ref_hid16 = reference_forward_bf16(x_tokens, hidden, params)
    jax.block_until_ready((ref_out32, ref_hid32, ref_out16, ref_hid16))

    decoder_step = jax.jit(decoder_forward, donate_argnums=(1,))
    outputs, new_hidden = decoder_step(x_tokens, hidden, prep)
    jax.block_until_ready((outputs, new_hidden))

    assert outputs.shape == (1, n, v) and new_hidden.shape == (NUM_LAYERS, n, h)
    # Tight check against a reference that mirrors the kernel's bf16 MXU inputs.
    assert jnp.allclose(outputs, ref_out16, atol=1e-3, rtol=1e-3)
    assert jnp.allclose(new_hidden, ref_hid16, atol=1e-3, rtol=1e-3)
    # Loose semantic check against the full-f32 torch-equivalent math.
    assert jnp.allclose(outputs, ref_out32, atol=1e-1, rtol=1e-1)
    assert jnp.allclose(new_hidden, ref_hid32, atol=1e-1, rtol=1e-1)

    print("KERNEL_OK")
</pallas_src>

<mosaic_0001>
module attributes {stable_mosaic.version = 11 : i64} {
  func.func @_decoder_step_kernel(%arg0: memref<8xi32, #tpu.memory_space<smem>>, %arg1: memref<256x128xf32, #tpu.memory_space<any>>, %arg2: memref<3x8x128xf32, #tpu.memory_space<vmem>>, %arg3: memref<3x128x128xbf16, #tpu.memory_space<vmem>>, %arg4: memref<3x128x128xbf16, #tpu.memory_space<vmem>>, %arg5: memref<3x1x128xf32, #tpu.memory_space<vmem>>, %arg6: memref<128x256xbf16, #tpu.memory_space<vmem>>, %arg7: memref<1x256xf32, #tpu.memory_space<vmem>>, %arg8: memref<8x256xf32, #tpu.memory_space<vmem>>, %arg9: memref<3x8x128xf32, #tpu.memory_space<vmem>>, %arg10: memref<8x128xf32, #tpu.memory_space<vmem>>, %arg11: memref<8x!tpu.dma_semaphore, #tpu.memory_space<semaphore_mem>>) attributes {dimension_semantics = [], scalar_prefetch = 0 : i64, scratch_operands = 2 : i64, tpu.core_type = #tpu.core_type<tc>} {
    %c0 = arith.constant 0 : index
    %0 = memref.load %arg0[%c0] : memref<8xi32, #tpu.memory_space<smem>>
    %c0_i32 = arith.constant 0 : i32
    %c0_i32_0 = arith.constant 0 : i32
    %1 = tpu.memref_slice %arg1[%0, %c0_i32_0] : memref<256x128xf32, #tpu.memory_space<any>> -> memref<1x128xf32, #tpu.memory_space<any>>
    %c0_i32_1 = arith.constant 0 : i32
    %c0_i32_2 = arith.constant 0 : i32
    %2 = tpu.memref_slice %arg10[%c0_i32_1, %c0_i32_2] : memref<8x128xf32, #tpu.memory_space<vmem>> -> memref<1x128xf32, #tpu.memory_space<vmem>>
    %3 = tpu.memref_slice %arg11[%c0_i32] : memref<8x!tpu.dma_semaphore, #tpu.memory_space<semaphore_mem>> -> memref<1x!tpu.dma_semaphore, #tpu.memory_space<semaphore_mem>>
    %4 = tpu.memref_squeeze %3 : memref<1x!tpu.dma_semaphore, #tpu.memory_space<semaphore_mem>> -> memref<!tpu.dma_semaphore, #tpu.memory_space<semaphore_mem>>
    tpu.enqueue_dma source(%1 : memref<1x128xf32, #tpu.memory_space<any>>) target(%2 : memref<1x128xf32, #tpu.memory_space<vmem>>) target_semaphore(%4 : memref<!tpu.dma_semaphore, #tpu.memory_space<semaphore_mem>>)
    %c1 = arith.constant 1 : index
    %5 = memref.load %arg0[%c1] : memref<8xi32, #tpu.memory_space<smem>>
    %c1_i32 = arith.constant 1 : i32
    %c0_i32_3 = arith.constant 0 : i32
    %6 = tpu.memref_slice %arg1[%5, %c0_i32_3] : memref<256x128xf32, #tpu.memory_space<any>> -> memref<1x128xf32, #tpu.memory_space<any>>
    %c1_i32_4 = arith.constant 1 : i32
    %c0_i32_5 = arith.constant 0 : i32
    %7 = tpu.memref_slice %arg10[%c1_i32_4, %c0_i32_5] : memref<8x128xf32, #tpu.memory_space<vmem>> -> memref<1x128xf32, #tpu.memory_space<vmem>>
    %8 = tpu.memref_slice %arg11[%c1_i32] : memref<8x!tpu.dma_semaphore, #tpu.memory_space<semaphore_mem>> -> memref<1x!tpu.dma_semaphore, #tpu.memory_space<semaphore_mem>>
    %9 = tpu.memref_squeeze %8 : memref<1x!tpu.dma_semaphore, #tpu.memory_space<semaphore_mem>> -> memref<!tpu.dma_semaphore, #tpu.memory_space<semaphore_mem>>
    tpu.enqueue_dma source(%6 : memref<1x128xf32, #tpu.memory_space<any>>) target(%7 : memref<1x128xf32, #tpu.memory_space<vmem>>) target_semaphore(%9 : memref<!tpu.dma_semaphore, #tpu.memory_space<semaphore_mem>>)
    %c2 = arith.constant 2 : index
    %10 = memref.load %arg0[%c2] : memref<8xi32, #tpu.memory_space<smem>>
    %c2_i32 = arith.constant 2 : i32
    %c0_i32_6 = arith.constant 0 : i32
    %11 = tpu.memref_slice %arg1[%10, %c0_i32_6] : memref<256x128xf32, #tpu.memory_space<any>> -> memref<1x128xf32, #tpu.memory_space<any>>
    %c2_i32_7 = arith.constant 2 : i32
    %c0_i32_8 = arith.constant 0 : i32
    %12 = tpu.memref_slice %arg10[%c2_i32_7, %c0_i32_8] : memref<8x128xf32, #tpu.memory_space<vmem>> -> memref<1x128xf32, #tpu.memory_space<vmem>>
    %13 = tpu.memref_slice %arg11[%c2_i32] : memref<8x!tpu.dma_semaphore, #tpu.memory_space<semaphore_mem>> -> memref<1x!tpu.dma_semaphore, #tpu.memory_space<semaphore_mem>>
    %14 = tpu.memref_squeeze %13 : memref<1x!tpu.dma_semaphore, #tpu.memory_space<semaphore_mem>> -> memref<!tpu.dma_semaphore, #tpu.memory_space<semaphore_mem>>
    tpu.enqueue_dma source(%11 : memref<1x128xf32, #tpu.memory_space<any>>) target(%12 : memref<1x128xf32, #tpu.memory_space<vmem>>) target_semaphore(%14 : memref<!tpu.dma_semaphore, #tpu.memory_space<semaphore_mem>>)
    %c3 = arith.constant 3 : index
    %15 = memref.load %arg0[%c3] : memref<8xi32, #tpu.memory_space<smem>>
    %c3_i32 = arith.constant 3 : i32
    %c0_i32_9 = arith.constant 0 : i32
    %16 = tpu.memref_slice %arg1[%15, %c0_i32_9] : memref<256x128xf32, #tpu.memory_space<any>> -> memref<1x128xf32, #tpu.memory_space<any>>
    %c3_i32_10 = arith.constant 3 : i32
    %c0_i32_11 = arith.constant 0 : i32
    %17 = tpu.memref_slice %arg10[%c3_i32_10, %c0_i32_11] : memref<8x128xf32, #tpu.memory_space<vmem>> -> memref<1x128xf32, #tpu.memory_space<vmem>>
    %18 = tpu.memref_slice %arg11[%c3_i32] : memref<8x!tpu.dma_semaphore, #tpu.memory_space<semaphore_mem>> -> memref<1x!tpu.dma_semaphore, #tpu.memory_space<semaphore_mem>>
    %19 = tpu.memref_squeeze %18 : memref<1x!tpu.dma_semaphore, #tpu.memory_space<semaphore_mem>> -> memref<!tpu.dma_semaphore, #tpu.memory_space<semaphore_mem>>
    tpu.enqueue_dma source(%16 : memref<1x128xf32, #tpu.memory_space<any>>) target(%17 : memref<1x128xf32, #tpu.memory_space<vmem>>) target_semaphore(%19 : memref<!tpu.dma_semaphore, #tpu.memory_space<semaphore_mem>>)
    %c4 = arith.constant 4 : index
    %20 = memref.load %arg0[%c4] : memref<8xi32, #tpu.memory_space<smem>>
    %c4_i32 = arith.constant 4 : i32
    %c0_i32_12 = arith.constant 0 : i32
    %21 = tpu.memref_slice %arg1[%20, %c0_i32_12] : memref<256x128xf32, #tpu.memory_space<any>> -> memref<1x128xf32, #tpu.memory_space<any>>
    %c4_i32_13 = arith.constant 4 : i32
    %c0_i32_14 = arith.constant 0 : i32
    %22 = tpu.memref_slice %arg10[%c4_i32_13, %c0_i32_14] : memref<8x128xf32, #tpu.memory_space<vmem>> -> memref<1x128xf32, #tpu.memory_space<vmem>>
    %23 = tpu.memref_slice %arg11[%c4_i32] : memref<8x!tpu.dma_semaphore, #tpu.memory_space<semaphore_mem>> -> memref<1x!tpu.dma_semaphore, #tpu.memory_space<semaphore_mem>>
    %24 = tpu.memref_squeeze %23 : memref<1x!tpu.dma_semaphore, #tpu.memory_space<semaphore_mem>> -> memref<!tpu.dma_semaphore, #tpu.memory_space<semaphore_mem>>
    tpu.enqueue_dma source(%21 : memref<1x128xf32, #tpu.memory_space<any>>) target(%22 : memref<1x128xf32, #tpu.memory_space<vmem>>) target_semaphore(%24 : memref<!tpu.dma_semaphore, #tpu.memory_space<semaphore_mem>>)
    %c5 = arith.constant 5 : index
    %25 = memref.load %arg0[%c5] : memref<8xi32, #tpu.memory_space<smem>>
    %c5_i32 = arith.constant 5 : i32
    %c0_i32_15 = arith.constant 0 : i32
    %26 = tpu.memref_slice %arg1[%25, %c0_i32_15] : memref<256x128xf32, #tpu.memory_space<any>> -> memref<1x128xf32, #tpu.memory_space<any>>
    %c5_i32_16 = arith.constant 5 : i32
    %c0_i32_17 = arith.constant 0 : i32
    %27 = tpu.memref_slice %arg10[%c5_i32_16, %c0_i32_17] : memref<8x128xf32, #tpu.memory_space<vmem>> -> memref<1x128xf32, #tpu.memory_space<vmem>>
    %28 = tpu.memref_slice %arg11[%c5_i32] : memref<8x!tpu.dma_semaphore, #tpu.memory_space<semaphore_mem>> -> memref<1x!tpu.dma_semaphore, #tpu.memory_space<semaphore_mem>>
    %29 = tpu.memref_squeeze %28 : memref<1x!tpu.dma_semaphore, #tpu.memory_space<semaphore_mem>> -> memref<!tpu.dma_semaphore, #tpu.memory_space<semaphore_mem>>
    tpu.enqueue_dma source(%26 : memref<1x128xf32, #tpu.memory_space<any>>) target(%27 : memref<1x128xf32, #tpu.memory_space<vmem>>) target_semaphore(%29 : memref<!tpu.dma_semaphore, #tpu.memory_space<semaphore_mem>>)
    %c6 = arith.constant 6 : index
    %30 = memref.load %arg0[%c6] : memref<8xi32, #tpu.memory_space<smem>>
    %c6_i32 = arith.constant 6 : i32
    %c0_i32_18 = arith.constant 0 : i32
    %31 = tpu.memref_slice %arg1[%30, %c0_i32_18] : memref<256x128xf32, #tpu.memory_space<any>> -> memref<1x128xf32, #tpu.memory_space<any>>
    %c6_i32_19 = arith.constant 6 : i32
    %c0_i32_20 = arith.constant 0 : i32
    %32 = tpu.memref_slice %arg10[%c6_i32_19, %c0_i32_20] : memref<8x128xf32, #tpu.memory_space<vmem>> -> memref<1x128xf32, #tpu.memory_space<vmem>>
    %33 = tpu.memref_slice %arg11[%c6_i32] : memref<8x!tpu.dma_semaphore, #tpu.memory_space<semaphore_mem>> -> memref<1x!tpu.dma_semaphore, #tpu.memory_space<semaphore_mem>>
    %34 = tpu.memref_squeeze %33 : memref<1x!tpu.dma_semaphore, #tpu.memory_space<semaphore_mem>> -> memref<!tpu.dma_semaphore, #tpu.memory_space<semaphore_mem>>
    tpu.enqueue_dma source(%31 : memref<1x128xf32, #tpu.memory_space<any>>) target(%32 : memref<1x128xf32, #tpu.memory_space<vmem>>) target_semaphore(%34 : memref<!tpu.dma_semaphore, #tpu.memory_space<semaphore_mem>>)
    %c7 = arith.constant 7 : index
    %35 = memref.load %arg0[%c7] : memref<8xi32, #tpu.memory_space<smem>>
    %c7_i32 = arith.constant 7 : i32
    %c0_i32_21 = arith.constant 0 : i32
    %36 = tpu.memref_slice %arg1[%35, %c0_i32_21] : memref<256x128xf32, #tpu.memory_space<any>> -> memref<1x128xf32, #tpu.memory_space<any>>
    %c7_i32_22 = arith.constant 7 : i32
    %c0_i32_23 = arith.constant 0 : i32
    %37 = tpu.memref_slice %arg10[%c7_i32_22, %c0_i32_23] : memref<8x128xf32, #tpu.memory_space<vmem>> -> memref<1x128xf32, #tpu.memory_space<vmem>>
    %38 = tpu.memref_slice %arg11[%c7_i32] : memref<8x!tpu.dma_semaphore, #tpu.memory_space<semaphore_mem>> -> memref<1x!tpu.dma_semaphore, #tpu.memory_space<semaphore_mem>>
    %39 = tpu.memref_squeeze %38 : memref<1x!tpu.dma_semaphore, #tpu.memory_space<semaphore_mem>> -> memref<!tpu.dma_semaphore, #tpu.memory_space<semaphore_mem>>
    tpu.enqueue_dma source(%36 : memref<1x128xf32, #tpu.memory_space<any>>) target(%37 : memref<1x128xf32, #tpu.memory_space<vmem>>) target_semaphore(%39 : memref<!tpu.dma_semaphore, #tpu.memory_space<semaphore_mem>>)
    %c0_24 = arith.constant 0 : index
    %c0_25 = arith.constant 0 : index
    %c0_26 = arith.constant 0 : index
    %40 = vector.load %arg2[%c0_24, %c0_25, %c0_26] : memref<3x8x128xf32, #tpu.memory_space<vmem>>, vector<1x8x128xf32>
    %41 = vector.shape_cast %40 : vector<1x8x128xf32> to vector<8x128xf32>
    %42 = arith.truncf %41 : vector<8x128xf32> to vector<8x128xbf16>
    %c0_27 = arith.constant 0 : index
    %c0_28 = arith.constant 0 : index
    %c0_29 = arith.constant 0 : index
    %43 = vector.load %arg4[%c0_27, %c0_28, %c0_29] : memref<3x128x128xbf16, #tpu.memory_space<vmem>>, vector<1x128x128xbf16>
    %44 = vector.shape_cast %43 : vector<1x128x128xbf16> to vector<128x128xbf16>
    %cst = arith.constant dense<0.000000e+00> : vector<8x128xf32>
    %45 = tpu.matmul %42, %44, %cst {dimension_numbers = #tpu.dot_dimension_numbers<[1], [0], [0], [1], [0, 0, 1, 1], [], []>} : vector<8x128xbf16>, vector<128x128xbf16>, vector<8x128xf32> -> vector<8x128xf32>
    %c0_30 = arith.constant 0 : index
    %c0_31 = arith.constant 0 : index
    %c0_32 = arith.constant 0 : index
    %46 = vector.load %arg5[%c0_30, %c0_31, %c0_32] : memref<3x1x128xf32, #tpu.memory_space<vmem>>, vector<1x1x128xf32>
    %47 = vector.shape_cast %46 : vector<1x1x128xf32> to vector<1x128xf32>
    %48 = vector.broadcast %47 : vector<1x128xf32> to vector<8x128xf32>
    %49 = arith.addf %45, %48 : vector<8x128xf32>
    %c1_33 = arith.constant 1 : index
    %c0_34 = arith.constant 0 : index
    %c0_35 = arith.constant 0 : index
    %50 = vector.load %arg2[%c1_33, %c0_34, %c0_35] : memref<3x8x128xf32, #tpu.memory_space<vmem>>, vector<1x8x128xf32>
    %51 = vector.shape_cast %50 : vector<1x8x128xf32> to vector<8x128xf32>
    %52 = arith.truncf %51 : vector<8x128xf32> to vector<8x128xbf16>
    %c1_36 = arith.constant 1 : index
    %c0_37 = arith.constant 0 : index
    %c0_38 = arith.constant 0 : index
    %53 = vector.load %arg4[%c1_36, %c0_37, %c0_38] : memref<3x128x128xbf16, #tpu.memory_space<vmem>>, vector<1x128x128xbf16>
    %54 = vector.shape_cast %53 : vector<1x128x128xbf16> to vector<128x128xbf16>
    %cst_39 = arith.constant dense<0.000000e+00> : vector<8x128xf32>
    %55 = tpu.matmul %52, %54, %cst_39 {dimension_numbers = #tpu.dot_dimension_numbers<[1], [0], [0], [1], [0, 0, 1, 1], [], []>} : vector<8x128xbf16>, vector<128x128xbf16>, vector<8x128xf32> -> vector<8x128xf32>
    %c1_40 = arith.constant 1 : index
    %c0_41 = arith.constant 0 : index
    %c0_42 = arith.constant 0 : index
    %56 = vector.load %arg5[%c1_40, %c0_41, %c0_42] : memref<3x1x128xf32, #tpu.memory_space<vmem>>, vector<1x1x128xf32>
    %57 = vector.shape_cast %56 : vector<1x1x128xf32> to vector<1x128xf32>
    %58 = vector.broadcast %57 : vector<1x128xf32> to vector<8x128xf32>
    %59 = arith.addf %55, %58 : vector<8x128xf32>
    %c2_43 = arith.constant 2 : index
    %c0_44 = arith.constant 0 : index
    %c0_45 = arith.constant 0 : index
    %60 = vector.load %arg2[%c2_43, %c0_44, %c0_45] : memref<3x8x128xf32, #tpu.memory_space<vmem>>, vector<1x8x128xf32>
    %61 = vector.shape_cast %60 : vector<1x8x128xf32> to vector<8x128xf32>
    %62 = arith.truncf %61 : vector<8x128xf32> to vector<8x128xbf16>
    %c2_46 = arith.constant 2 : index
    %c0_47 = arith.constant 0 : index
    %c0_48 = arith.constant 0 : index
    %63 = vector.load %arg4[%c2_46, %c0_47, %c0_48] : memref<3x128x128xbf16, #tpu.memory_space<vmem>>, vector<1x128x128xbf16>
    %64 = vector.shape_cast %63 : vector<1x128x128xbf16> to vector<128x128xbf16>
    %cst_49 = arith.constant dense<0.000000e+00> : vector<8x128xf32>
    %65 = tpu.matmul %62, %64, %cst_49 {dimension_numbers = #tpu.dot_dimension_numbers<[1], [0], [0], [1], [0, 0, 1, 1], [], []>} : vector<8x128xbf16>, vector<128x128xbf16>, vector<8x128xf32> -> vector<8x128xf32>
    %c2_50 = arith.constant 2 : index
    %c0_51 = arith.constant 0 : index
    %c0_52 = arith.constant 0 : index
    %66 = vector.load %arg5[%c2_50, %c0_51, %c0_52] : memref<3x1x128xf32, #tpu.memory_space<vmem>>, vector<1x1x128xf32>
    %67 = vector.shape_cast %66 : vector<1x1x128xf32> to vector<1x128xf32>
    %68 = vector.broadcast %67 : vector<1x128xf32> to vector<8x128xf32>
    %69 = arith.addf %65, %68 : vector<8x128xf32>
    %c0_i32_53 = arith.constant 0 : i32
    %c0_i32_54 = arith.constant 0 : i32
    %70 = tpu.memref_slice %arg1[%0, %c0_i32_54] : memref<256x128xf32, #tpu.memory_space<any>> -> memref<1x128xf32, #tpu.memory_space<any>>
    %c0_i32_55 = arith.constant 0 : i32
    %c0_i32_56 = arith.constant 0 : i32
    %71 = tpu.memref_slice %arg10[%c0_i32_55, %c0_i32_56] : memref<8x128xf32, #tpu.memory_space<vmem>> -> memref<1x128xf32, #tpu.memory_space<vmem>>
    %72 = tpu.memref_slice %arg11[%c0_i32_53] : memref<8x!tpu.dma_semaphore, #tpu.memory_space<semaphore_mem>> -> memref<1x!tpu.dma_semaphore, #tpu.memory_space<semaphore_mem>>
    %73 = tpu.memref_squeeze %72 : memref<1x!tpu.dma_semaphore, #tpu.memory_space<semaphore_mem>> -> memref<!tpu.dma_semaphore, #tpu.memory_space<semaphore_mem>>
    tpu.wait_dma2 semaphore(%73 : memref<!tpu.dma_semaphore, #tpu.memory_space<semaphore_mem>>) src(%70 : memref<1x128xf32, #tpu.memory_space<any>>) dst(%71 : memref<1x128xf32, #tpu.memory_space<vmem>>)
    %c1_i32_57 = arith.constant 1 : i32
    %c0_i32_58 = arith.constant 0 : i32
    %74 = tpu.memref_slice %arg1[%5, %c0_i32_58] : memref<256x128xf32, #tpu.memory_space<any>> -> memref<1x128xf32, #tpu.memory_space<any>>
    %c1_i32_59 = arith.constant 1 : i32
    %c0_i32_60 = arith.constant 0 : i32
    %75 = tpu.memref_slice %arg10[%c1_i32_59, %c0_i32_60] : memref<8x128xf32, #tpu.memory_space<vmem>> -> memref<1x128xf32, #tpu.memory_space<vmem>>
    %76 = tpu.memref_slice %arg11[%c1_i32_57] : memref<8x!tpu.dma_semaphore, #tpu.memory_space<semaphore_mem>> -> memref<1x!tpu.dma_semaphore, #tpu.memory_space<semaphore_mem>>
    %77 = tpu.memref_squeeze %76 : memref<1x!tpu.dma_semaphore, #tpu.memory_space<semaphore_mem>> -> memref<!tpu.dma_semaphore, #tpu.memory_space<semaphore_mem>>
    tpu.wait_dma2 semaphore(%77 : memref<!tpu.dma_semaphore, #tpu.memory_space<semaphore_mem>>) src(%74 : memref<1x128xf32, #tpu.memory_space<any>>) dst(%75 : memref<1x128xf32, #tpu.memory_space<vmem>>)
    %c2_i32_61 = arith.constant 2 : i32
    %c0_i32_62 = arith.constant 0 : i32
    %78 = tpu.memref_slice %arg1[%10, %c0_i32_62] : memref<256x128xf32, #tpu.memory_space<any>> -> memref<1x128xf32, #tpu.memory_space<any>>
    %c2_i32_63 = arith.constant 2 : i32
    %c0_i32_64 = arith.constant 0 : i32
    %79 = tpu.memref_slice %arg10[%c2_i32_63, %c0_i32_64] : memref<8x128xf32, #tpu.memory_space<vmem>> -> memref<1x128xf32, #tpu.memory_space<vmem>>
    %80 = tpu.memref_slice %arg11[%c2_i32_61] : memref<8x!tpu.dma_semaphore, #tpu.memory_space<semaphore_mem>> -> memref<1x!tpu.dma_semaphore, #tpu.memory_space<semaphore_mem>>
    %81 = tpu.memref_squeeze %80 : memref<1x!tpu.dma_semaphore, #tpu.memory_space<semaphore_mem>> -> memref<!tpu.dma_semaphore, #tpu.memory_space<semaphore_mem>>
    tpu.wait_dma2 semaphore(%81 : memref<!tpu.dma_semaphore, #tpu.memory_space<semaphore_mem>>) src(%78 : memref<1x128xf32, #tpu.memory_space<any>>) dst(%79 : memref<1x128xf32, #tpu.memory_space<vmem>>)
    %c3_i32_65 = arith.constant 3 : i32
    %c0_i32_66 = arith.constant 0 : i32
    %82 = tpu.memref_slice %arg1[%15, %c0_i32_66] : memref<256x128xf32, #tpu.memory_space<any>> -> memref<1x128xf32, #tpu.memory_space<any>>
    %c3_i32_67 = arith.constant 3 : i32
    %c0_i32_68 = arith.constant 0 : i32
    %83 = tpu.memref_slice %arg10[%c3_i32_67, %c0_i32_68] : memref<8x128xf32, #tpu.memory_space<vmem>> -> memref<1x128xf32, #tpu.memory_space<vmem>>
    %84 = tpu.memref_slice %arg11[%c3_i32_65] : memref<8x!tpu.dma_semaphore, #tpu.memory_space<semaphore_mem>> -> memref<1x!tpu.dma_semaphore, #tpu.memory_space<semaphore_mem>>
    %85 = tpu.memref_squeeze %84 : memref<1x!tpu.dma_semaphore, #tpu.memory_space<semaphore_mem>> -> memref<!tpu.dma_semaphore, #tpu.memory_space<semaphore_mem>>
    tpu.wait_dma2 semaphore(%85 : memref<!tpu.dma_semaphore, #tpu.memory_space<semaphore_mem>>) src(%82 : memref<1x128xf32, #tpu.memory_space<any>>) dst(%83 : memref<1x128xf32, #tpu.memory_space<vmem>>)
    %c4_i32_69 = arith.constant 4 : i32
    %c0_i32_70 = arith.constant 0 : i32
    %86 = tpu.memref_slice %arg1[%20, %c0_i32_70] : memref<256x128xf32, #tpu.memory_space<any>> -> memref<1x128xf32, #tpu.memory_space<any>>
    %c4_i32_71 = arith.constant 4 : i32
    %c0_i32_72 = arith.constant 0 : i32
    %87 = tpu.memref_slice %arg10[%c4_i32_71, %c0_i32_72] : memref<8x128xf32, #tpu.memory_space<vmem>> -> memref<1x128xf32, #tpu.memory_space<vmem>>
    %88 = tpu.memref_slice %arg11[%c4_i32_69] : memref<8x!tpu.dma_semaphore, #tpu.memory_space<semaphore_mem>> -> memref<1x!tpu.dma_semaphore, #tpu.memory_space<semaphore_mem>>
    %89 = tpu.memref_squeeze %88 : memref<1x!tpu.dma_semaphore, #tpu.memory_space<semaphore_mem>> -> memref<!tpu.dma_semaphore, #tpu.memory_space<semaphore_mem>>
    tpu.wait_dma2 semaphore(%89 : memref<!tpu.dma_semaphore, #tpu.memory_space<semaphore_mem>>) src(%86 : memref<1x128xf32, #tpu.memory_space<any>>) dst(%87 : memref<1x128xf32, #tpu.memory_space<vmem>>)
    %c5_i32_73 = arith.constant 5 : i32
    %c0_i32_74 = arith.constant 0 : i32
    %90 = tpu.memref_slice %arg1[%25, %c0_i32_74] : memref<256x128xf32, #tpu.memory_space<any>> -> memref<1x128xf32, #tpu.memory_space<any>>
    %c5_i32_75 = arith.constant 5 : i32
    %c0_i32_76 = arith.constant 0 : i32
    %91 = tpu.memref_slice %arg10[%c5_i32_75, %c0_i32_76] : memref<8x128xf32, #tpu.memory_space<vmem>> -> memref<1x128xf32, #tpu.memory_space<vmem>>
    %92 = tpu.memref_slice %arg11[%c5_i32_73] : memref<8x!tpu.dma_semaphore, #tpu.memory_space<semaphore_mem>> -> memref<1x!tpu.dma_semaphore, #tpu.memory_space<semaphore_mem>>
    %93 = tpu.memref_squeeze %92 : memref<1x!tpu.dma_semaphore, #tpu.memory_space<semaphore_mem>> -> memref<!tpu.dma_semaphore, #tpu.memory_space<semaphore_mem>>
    tpu.wait_dma2 semaphore(%93 : memref<!tpu.dma_semaphore, #tpu.memory_space<semaphore_mem>>) src(%90 : memref<1x128xf32, #tpu.memory_space<any>>) dst(%91 : memref<1x128xf32, #tpu.memory_space<vmem>>)
    %c6_i32_77 = arith.constant 6 : i32
    %c0_i32_78 = arith.constant 0 : i32
    %94 = tpu.memref_slice %arg1[%30, %c0_i32_78] : memref<256x128xf32, #tpu.memory_space<any>> -> memref<1x128xf32, #tpu.memory_space<any>>
    %c6_i32_79 = arith.constant 6 : i32
    %c0_i32_80 = arith.constant 0 : i32
    %95 = tpu.memref_slice %arg10[%c6_i32_79, %c0_i32_80] : memref<8x128xf32, #tpu.memory_space<vmem>> -> memref<1x128xf32, #tpu.memory_space<vmem>>
    %96 = tpu.memref_slice %arg11[%c6_i32_77] : memref<8x!tpu.dma_semaphore, #tpu.memory_space<semaphore_mem>> -> memref<1x!tpu.dma_semaphore, #tpu.memory_space<semaphore_mem>>
    %97 = tpu.memref_squeeze %96 : memref<1x!tpu.dma_semaphore, #tpu.memory_space<semaphore_mem>> -> memref<!tpu.dma_semaphore, #tpu.memory_space<semaphore_mem>>
    tpu.wait_dma2 semaphore(%97 : memref<!tpu.dma_semaphore, #tpu.memory_space<semaphore_mem>>) src(%94 : memref<1x128xf32, #tpu.memory_space<any>>) dst(%95 : memref<1x128xf32, #tpu.memory_space<vmem>>)
    %c7_i32_81 = arith.constant 7 : i32
    %c0_i32_82 = arith.constant 0 : i32
    %98 = tpu.memref_slice %arg1[%35, %c0_i32_82] : memref<256x128xf32, #tpu.memory_space<any>> -> memref<1x128xf32, #tpu.memory_space<any>>
    %c7_i32_83 = arith.constant 7 : i32
    %c0_i32_84 = arith.constant 0 : i32
    %99 = tpu.memref_slice %arg10[%c7_i32_83, %c0_i32_84] : memref<8x128xf32, #tpu.memory_space<vmem>> -> memref<1x128xf32, #tpu.memory_space<vmem>>
    %100 = tpu.memref_slice %arg11[%c7_i32_81] : memref<8x!tpu.dma_semaphore, #tpu.memory_space<semaphore_mem>> -> memref<1x!tpu.dma_semaphore, #tpu.memory_space<semaphore_mem>>
    %101 = tpu.memref_squeeze %100 : memref<1x!tpu.dma_semaphore, #tpu.memory_space<semaphore_mem>> -> memref<!tpu.dma_semaphore, #tpu.memory_space<semaphore_mem>>
    tpu.wait_dma2 semaphore(%101 : memref<!tpu.dma_semaphore, #tpu.memory_space<semaphore_mem>>) src(%98 : memref<1x128xf32, #tpu.memory_space<any>>) dst(%99 : memref<1x128xf32, #tpu.memory_space<vmem>>)
    %c0_85 = arith.constant 0 : index
    %c0_86 = arith.constant 0 : index
    %102 = vector.load %arg10[%c0_85, %c0_86] : memref<8x128xf32, #tpu.memory_space<vmem>>, vector<8x128xf32>
    %103 = arith.truncf %102 : vector<8x128xf32> to vector<8x128xbf16>
    %c0_87 = arith.constant 0 : index
    %c0_88 = arith.constant 0 : index
    %c0_89 = arith.constant 0 : index
    %104 = vector.load %arg3[%c0_87, %c0_88, %c0_89] : memref<3x128x128xbf16, #tpu.memory_space<vmem>>, vector<1x128x128xbf16>
    %105 = vector.shape_cast %104 : vector<1x128x128xbf16> to vector<128x128xbf16>
    %cst_90 = arith.constant dense<0.000000e+00> : vector<8x128xf32>
    %106 = tpu.matmul %103, %105, %cst_90 {dimension_numbers = #tpu.dot_dimension_numbers<[1], [0], [0], [1], [0, 0, 1, 1], [], []>} : vector<8x128xbf16>, vector<128x128xbf16>, vector<8x128xf32> -> vector<8x128xf32>
    %107 = arith.addf %106, %49 : vector<8x128xf32>
    %108 = math.tanh %107 : vector<8x128xf32>
    %c0_91 = arith.constant 0 : index
    %c0_92 = arith.constant 0 : index
    %c0_93 = arith.constant 0 : index
    %109 = vector.load %arg9[%c0_91, %c0_92, %c0_93] : memref<3x8x128xf32, #tpu.memory_space<vmem>>, vector<1x8x128xf32>
    %110 = vector.shape_cast %109 : vector<1x8x128xf32> to vector<8x128xf32>
    %111 = vector.shape_cast %108 : vector<8x128xf32> to vector<1x8x128xf32>
    tpu.vector_store %arg9[%c0_91, %c0_92, %c0_93], %111 {strides = array<i32>} : memref<3x8x128xf32, #tpu.memory_space<vmem>>, vector<1x8x128xf32>,
    %112 = arith.truncf %108 : vector<8x128xf32> to vector<8x128xbf16>
    %c1_94 = arith.constant 1 : index
    %c0_95 = arith.constant 0 : index
    %c0_96 = arith.constant 0 : index
    %113 = vector.load %arg3[%c1_94, %c0_95, %c0_96] : memref<3x128x128xbf16, #tpu.memory_space<vmem>>, vector<1x128x128xbf16>
    %114 = vector.shape_cast %113 : vector<1x128x128xbf16> to vector<128x128xbf16>
    %cst_97 = arith.constant dense<0.000000e+00> : vector<8x128xf32>
    %115 = tpu.matmul %112, %114, %cst_97 {dimension_numbers = #tpu.dot_dimension_numbers<[1], [0], [0], [1], [0, 0, 1, 1], [], []>} : vector<8x128xbf16>, vector<128x128xbf16>, vector<8x128xf32> -> vector<8x128xf32>
    %116 = arith.addf %115, %59 : vector<8x128xf32>
    %117 = math.tanh %116 : vector<8x128xf32>
    %c1_98 = arith.constant 1 : index
    %c0_99 = arith.constant 0 : index
    %c0_100 = arith.constant 0 : index
    %118 = vector.load %arg9[%c1_98, %c0_99, %c0_100] : memref<3x8x128xf32, #tpu.memory_space<vmem>>, vector<1x8x128xf32>
    %119 = vector.shape_cast %118 : vector<1x8x128xf32> to vector<8x128xf32>
    %120 = vector.shape_cast %117 : vector<8x128xf32> to vector<1x8x128xf32>
    tpu.vector_store %arg9[%c1_98, %c0_99, %c0_100], %120 {strides = array<i32>} : memref<3x8x128xf32, #tpu.memory_space<vmem>>, vector<1x8x128xf32>,
    %121 = arith.truncf %117 : vector<8x128xf32> to vector<8x128xbf16>
    %c2_101 = arith.constant 2 : index
    %c0_102 = arith.constant 0 : index
    %c0_103 = arith.constant 0 : index
    %122 = vector.load %arg3[%c2_101, %c0_102, %c0_103] : memref<3x128x128xbf16, #tpu.memory_space<vmem>>, vector<1x128x128xbf16>
    %123 = vector.shape_cast %122 : vector<1x128x128xbf16> to vector<128x128xbf16>
    %cst_104 = arith.constant dense<0.000000e+00> : vector<8x128xf32>
    %124 = tpu.matmul %121, %123, %cst_104 {dimension_numbers = #tpu.dot_dimension_numbers<[1], [0], [0], [1], [0, 0, 1, 1], [], []>} : vector<8x128xbf16>, vector<128x128xbf16>, vector<8x128xf32> -> vector<8x128xf32>
    %125 = arith.addf %124, %69 : vector<8x128xf32>
    %126 = math.tanh %125 : vector<8x128xf32>
    %c2_105 = arith.constant 2 : index
    %c0_106 = arith.constant 0 : index
    %c0_107 = arith.constant 0 : index
    %127 = vector.load %arg9[%c2_105, %c0_106, %c0_107] : memref<3x8x128xf32, #tpu.memory_space<vmem>>, vector<1x8x128xf32>
    %128 = vector.shape_cast %127 : vector<1x8x128xf32> to vector<8x128xf32>
    %129 = vector.shape_cast %126 : vector<8x128xf32> to vector<1x8x128xf32>
    tpu.vector_store %arg9[%c2_105, %c0_106, %c0_107], %129 {strides = array<i32>} : memref<3x8x128xf32, #tpu.memory_space<vmem>>, vector<1x8x128xf32>,
    %130 = arith.truncf %126 : vector<8x128xf32> to vector<8x128xbf16>
    %c0_108 = arith.constant 0 : index
    %c0_109 = arith.constant 0 : index
    %131 = vector.load %arg6[%c0_108, %c0_109] : memref<128x256xbf16, #tpu.memory_space<vmem>>, vector<128x256xbf16>
    %cst_110 = arith.constant dense<0.000000e+00> : vector<8x256xf32>
    %132 = tpu.matmul %130, %131, %cst_110 {dimension_numbers = #tpu.dot_dimension_numbers<[1], [0], [0], [1], [0, 0, 1, 1], [], []>} : vector<8x128xbf16>, vector<128x256xbf16>, vector<8x256xf32> -> vector<8x256xf32>
    %c0_111 = arith.constant 0 : index
    %c0_112 = arith.constant 0 : index
    %133 = vector.load %arg7[%c0_111, %c0_112] : memref<1x256xf32, #tpu.memory_space<vmem>>, vector<1x256xf32>
    %134 = vector.broadcast %133 : vector<1x256xf32> to vector<8x256xf32>
    %135 = arith.addf %132, %134 : vector<8x256xf32>
    %c0_113 = arith.constant 0 : index
    %c0_114 = arith.constant 0 : index
    %136 = vector.load %arg8[%c0_113, %c0_114] : memref<8x256xf32, #tpu.memory_space<vmem>>, vector<8x256xf32>
    tpu.vector_store %arg8[%c0_113, %c0_114], %135 {strides = array<i32>} : memref<8x256xf32, #tpu.memory_space<vmem>>, vector<8x256xf32>,
    return
  }
}

</mosaic_0001>

<bundles_post_ra>
// kernel: decoder_forward.1
= control target key start
LH: loop header
LB: loop body
LE: loop exit
PB: predicated region body
PF: predicated region fallthrough
CT: control target
= control target key end

     0   :  { %s2333_s0 = inlined_call_operand.vmem [shape: s32[8], index: 0, kind: input, shape index: {}]   ;;  %s2334_s1 = inlined_call_operand.hbm [shape: f32[256,128], index: 1, kind: input, shape index: {}]   ;;  %s2335_s2 = inlined_call_operand.hbm [shape: f32[3,8,128], index: 2, kind: input, shape index: {}, may-alias: {2,9}]   ;;  %s2336_s3 = inlined_call_operand.hbm [shape: bf16[3,128,128], index: 3, kind: input, shape index: {}]   ;;  %s2337_s4 = inlined_call_operand.hbm [shape: bf16[3,128,128], index: 4, kind: input, shape index: {}]   ;;  %s2338_s5 = inlined_call_operand.vmem [shape: f32[3,1,128], index: 5, kind: input, shape index: {}]   ;;  %s2339_s6 = inlined_call_operand.hbm [shape: bf16[128,256], index: 6, kind: input, shape index: {}]   ;;  %s2340_s7 = inlined_call_operand.vmem [shape: f32[1,256], index: 7, kind: input, shape index: {}]   ;;  %s2341_s8 = inlined_call_operand.hbm [shape: f32[8,256], index: 8, kind: output, shape index: {0}]   ;;  %s2342_s9 = inlined_call_operand.hbm [shape: f32[3,8,128], index: 9, kind: output, shape index: {1}, may-alias: {2,9}]  }
   0x1   :  { %2346 = sst [smem:[#allocation49_spill]] %s2341_s8 }
   0x2   :  { %15 = vsyncpa [#allocation7], 0 }
   0x3   :  { %16 = vsyncpa [#allocation5], 0 }
   0x4   :  { %17 = vsyncpa [#allocation10], 0 }
   0x5   :  { %18 = vsyncpa [#allocation13], 0 }
   0x6   :  { %19 = vsyncpa [#allocation6], 0 }
   0x7   :  { %20 = vsyncpa [#allocation16], 0  ;;  %s1916_s30 = smov [#allocation9]   ;;  %s27_s13 = sshll.u32 %s2333_s0, 4  ;;  %s28_s13 = int_to_ptr.vmem [resolvable:$true] %s27_s13 }
   0x8   :  { %s48_s10 = sshll.u32 %s1916_s30, 4  ;;  %s1552_s16 = scalar_lea.hbm %s2336_s3, 3072  ;;  %s49_s10 = int_to_ptr.vmem [resolvable:$true] %s48_s10 }
   0x9   :  { %p1553_p0 = scmp.ne.s32.totalorder %s2336_s3, %s1552_s16  ;;  %p1556_p1 = scmp.lt.u32.totalorder %s1552_s16, %s2336_s3 }
   0xb   :  { %p1558_p2 = pnand %p1556_p1, %p1553_p0 }
   0xd   :  { %1561 = shalt.err (!%p1558_p2)
}
   0xe   :  { %s1562_s21 = scalar_lea.vmem %s49_s10, 3072  ;;  %p1567_p4 = scmp.lt.s32.totalorder %s49_s10, %s49_s10 }
   0xf   :  { %p1563_p3 = scmp.ne.s32.totalorder %s49_s10, %s1562_s21  ;;  %p1568_p5 = scmp.lt.s32.totalorder %s1562_s21, %s1562_s21 }
  0x11   :  { %p1569_p6 = por %p1568_p5, %p1567_p4 }
  0x13   :  { %p1570_p7 = pnand %p1569_p6, %p1563_p3 }
  0x15   :  { %1573 = shalt.err (!%p1570_p7)
}
  0x16   :  { %s1917_s0 = smov 64   ;;  %s1918_s22 = smov 4  }
  0x17   :  { %54 = dma.hbm_to_vmem [thread:$0]  %s2336_s3, 3072, %s49_s10, [#allocation10], %s1917_s0, %s1917_s0, %s1918_s22  }
  0x18   :  { %s1574_s25 = scalar_lea.vmem %s28_s13, 16  ;;  %p1579_p9 = scmp.lt.s32.totalorder %s28_s13, %s28_s13 }
  0x19   :  { %p1575_p8 = scmp.ne.s32.totalorder %s28_s13, %s1574_s25  ;;  %p1580_p10 = scmp.lt.s32.totalorder %s1574_s25, %s1574_s25 }
  0x1b   :  { %p1581_p11 = por %p1580_p10, %p1579_p9 }
  0x1d   :  { %p1582_p12 = pnand %p1581_p11, %p1575_p8 }
  0x1f   :  { %1585 = shalt.err (!%p1582_p12)
}
  0x20   :  { %s1919_s26 = smov [#allocation4]   ;;  %s1920_s27 = smov [#allocation8]  }
  0x21   :  { %30 = dma.vmem_to_smem %s28_s13, 16, %s1919_s26, [#allocation7]  }
  0x22   :  { %s36_s28 = sshll.u32 %s1920_s27, 4  ;;  %s1586_s11 = scalar_lea.hbm %s2335_s2, 384  ;;  %s37_s28 = int_to_ptr.vmem [resolvable:$true] %s36_s28 }
  0x23   :  { %p1587_p13 = scmp.ne.s32.totalorder %s2335_s2, %s1586_s11  ;;  %p1590_p0 = scmp.lt.u32.totalorder %s1586_s11, %s2335_s2 }
  0x25   :  { %p1592_p1 = pnand %p1590_p0, %p1587_p13 }
  0x27   :  { %1595 = shalt.err (!%p1592_p1)
}
  0x28   :  { %s1596_s15 = scalar_lea.vmem %s37_s28, 384  ;;  %p1601_p3 = scmp.lt.s32.totalorder %s37_s28, %s37_s28 }
  0x29   :  { %p1597_p2 = scmp.ne.s32.totalorder %s37_s28, %s1596_s15  ;;  %p1602_p4 = scmp.lt.s32.totalorder %s1596_s15, %s1596_s15 }
  0x2b   :  { %p1603_p5 = por %p1602_p4, %p1601_p3 }
  0x2d   :  { %p1604_p6 = pnand %p1603_p5, %p1597_p2 }
  0x2f   :  { %1607 = shalt.err (!%p1604_p6)
}
  0x30   :  { %s2343_s13 = smov 128   ;;  %s2344_s16 = smov 8  }
  0x31   :  { %42 = dma.hbm_to_vmem [thread:$0]  %s2335_s2, 384, %s37_s28, [#allocation5], %s2343_s13, %s2343_s13, %s2344_s16  }
  0x32   :  { %s1923_s19 = smov [#allocation11]   ;;  %s1924_s21 = smov [#allocation12]  }
  0x33   :  { %s60_s20 = sshll.u32 %s1923_s19, 4  ;;  %s74_s23 = sshll.u32 %s1924_s21, 4  ;;  %s61_s20 = int_to_ptr.vmem [resolvable:$true] %s60_s20  ;;  %s75_s23 = int_to_ptr.vmem [resolvable:$true] %s74_s23 }
  0x34   :  { %s1608_s26 = scalar_lea.hbm %s2337_s4, 3072 }
  0x35   :  { %p1609_p7 = scmp.ne.s32.totalorder %s2337_s4, %s1608_s26  ;;  %p1612_p8 = scmp.lt.u32.totalorder %s1608_s26, %s2337_s4 }
  0x37   :  { %p1614_p9 = pnand %p1612_p8, %p1609_p7 }
  0x39   :  { %1617 = shalt.err (!%p1614_p9)
}
  0x3a   :  { %s1618_s2 = scalar_lea.vmem %s61_s20, 3072  ;;  %p1623_p11 = scmp.lt.s32.totalorder %s61_s20, %s61_s20 }
  0x3b   :  { %p1619_p10 = scmp.ne.s32.totalorder %s61_s20, %s1618_s2  ;;  %p1624_p12 = scmp.lt.s32.totalorder %s1618_s2, %s1618_s2 }
  0x3d   :  { %p1625_p13 = por %p1624_p12, %p1623_p11 }
  0x3f   :  { %p1626_p0 = pnand %p1625_p13, %p1619_p10 }
  0x41   :  { %1629 = shalt.err (!%p1626_p0)
}
  0x42   :  { %66 = dma.hbm_to_vmem [thread:$0]  %s2337_s4, 3072, %s61_s20, [#allocation10], %s1917_s0, %s1917_s0, %s1918_s22  }
  0x43   :  { %s1630_s10 = scalar_lea.hbm %s2339_s6, 2048 }
  0x44   :  { %p1631_p1 = scmp.ne.s32.totalorder %s2339_s6, %s1630_s10  ;;  %p1634_p2 = scmp.lt.u32.totalorder %s1630_s10, %s2339_s6 }
  0x46   :  { %p1636_p3 = pnand %p1634_p2, %p1631_p1 }
  0x48   :  { %1639 = shalt.err (!%p1636_p3)
}
  0x49   :  { %s1640_s21 = scalar_lea.vmem %s75_s23, 2048  ;;  %p1645_p5 = scmp.lt.s32.totalorder %s75_s23, %s75_s23 }
  0x4a   :  { %p1641_p4 = scmp.ne.s32.totalorder %s75_s23, %s1640_s21  ;;  %p1646_p6 = scmp.lt.s32.totalorder %s1640_s21, %s1640_s21 }
  0x4c   :  { %p1647_p7 = por %p1646_p6, %p1645_p5 }
  0x4e   :  { %p1648_p8 = pnand %p1647_p7, %p1641_p4 }
  0x50   :  { %1651 = shalt.err (!%p1648_p8)
}
  0x51   :  { %80 = dma.hbm_to_vmem [thread:$0]  %s2339_s6, 2048, %s75_s23, [#allocation13], %s2343_s13, %s2343_s13, %s2344_s16  }
  0x52   :  { %1888 = dma.done.wait [#allocation7], 16  }
  0x53   :  { %1889 = vsyncadd [#allocation7], 4294967280 }
  0x54   :  { %1890 = dma.done.wait [#allocation5], 384  }
  0x55   :  { %1891 = vsyncadd [#allocation5], 4294966912 }
  0x56   :  { %1892 = dma.done.wait [#allocation10], 6144  }
  0x57   :  { %1893 = vsyncadd [#allocation10], 4294961152 }
  0x58   :  { %1894 = dma.done.wait [#allocation13], 2048  }
  0x59   :  { %1895 = vsyncadd [#allocation13], 4294965248 }
  0x5a   :  { %98 = sfence }
  0x5b   :  { %v2054_v0 = vld [vmem:[%s2338_s5] ss:$0 sm:$0xff]  ;;  %v1925_v2 = vmov 0.0   ;;  %v1475_v3 = vld [vmem:[#allocation11 + $0x8] sm:$0xff]   ;;  %vm1926_vm0 = vmmov 0   ;;  %v1476_v4 = vld [vmem:[#allocation11 + $0x10] sm:$0xff]  }
  0x5c   :  { %v1474_v1 = vld [vmem:[#allocation11] sm:$0xff]   ;;  %1317 = vmatprep.subr.bf16.mxu0 %v1925_v2  ;;  %1337 = vmatprep.subr.bf16.mxu1 %v1925_v2  ;;  %v1477_v7 = vld [vmem:[#allocation11 + $0x18] sm:$0xff]   ;;  %s1927_s26 = smov [#allocation2]   ;;  %v1484_v9 = vld [vmem:[#allocation11 + $0x48] sm:$0xff]   ;;  %s1928_s29 = smov [#allocation2 + $0x1]  }
  0x5d   :  { %1318 = vmatpush3.bf16.msra.mxu0 %v1474_v1  ;;  %1333 = vmatprep.mubr.msk.bf16.mxu0 %vm1926_vm0, %v1925_v2  ;;  %v2067_v5 = vld [vmem:[%s2338_s5 + $0x1] ss:$0 sm:$0xff]  ;;  %v2072_v6 = vld [vmem:[%s2338_s5 + $0x2] ss:$0 sm:$0xff]  ;;  %s110_s27 = sshll.u32 %s1927_s26, 4  ;;  %s126_s30 = sshll.u32 %s1928_s29, 4  ;;  %s2076_s27 = int_to_ptr.vmem [resolvable:$true] %s110_s27  ;;  %s2079_s30 = int_to_ptr.vmem [resolvable:$true] %s126_s30 }
  0x5e   :  { %1319 = vmatprep.subr.bf16.mxu0 %v1925_v2  ;;  %1353 = vmatprep.mubr.msk.bf16.mxu1 %vm1926_vm0, %v1925_v2  ;;  %v1482_v8 = vld [vmem:[#allocation11 + $0x40] sm:$0xff]   ;;  %v1479_v11 = vld [vmem:[#allocation11 + $0x28] sm:$0xff]   ;;  %v1486_v12 = vld [vmem:[#allocation11 + $0x50] sm:$0xff]   ;;  %s1929_s5 = smov [#allocation2 + $0x2]   ;;  %s1930_s2 = smov [#allocation2 + $0x3]  }
  0x5f   :  { %1338 = vmatpush3.bf16.msra.mxu1 %v1482_v8  ;;  %v1478_v10 = vld [vmem:[#allocation11 + $0x20] sm:$0xff]   ;;  %s142_s11 = sshll.u32 %s1929_s5, 4  ;;  %s158_s28 = sshll.u32 %s1930_s2, 4  ;;  %v1488_v13 = vld [vmem:[#allocation11 + $0x58] sm:$0xff]   ;;  %v1480_v14 = vld [vmem:[#allocation11 + $0x30] sm:$0xff]   ;;  %s2083_s11 = int_to_ptr.vmem [resolvable:$true] %s142_s11  ;;  %s2086_s28 = int_to_ptr.vmem [resolvable:$true] %s158_s28 }
  0x60   :  { %1339 = vmatprep.subr.bf16.mxu1 %v1925_v2  ;;  %s1931_s12 = smov [#allocation2 + $0x4]   ;;  %s1932_s3 = smov [#allocation2 + $0x5]   ;;  %v1490_v15 = vld [vmem:[#allocation11 + $0x60] sm:$0xff]   ;;  %v1481_v16 = vld [vmem:[#allocation11 + $0x38] sm:$0xff]   ;;  %v226_v17 = vld [vmem:[#allocation8] sm:$0xff] }
  0x61   :  { %1320 = vmatpush3.bf16.msra.mxu0 %v1475_v3  ;;  %s174_s14 = sshll.u32 %s1931_s12, 4  ;;  %s190_s10 = sshll.u32 %s1932_s3, 4  ;;  %v1492_v18 = vld [vmem:[#allocation11 + $0x68] sm:$0xff]   ;;  %v227_v19 = vpack.c.bf16 %v226_v17, %v226_v17  ;;  %s2088_s14 = int_to_ptr.vmem [resolvable:$true] %s174_s14  ;;  %s2097_s10 = int_to_ptr.vmem [resolvable:$true] %s190_s10 }
  0x62   :  { %1321 = vmatprep.subr.bf16.mxu0 %v1925_v2  ;;  %s1933_s15 = smov [#allocation2 + $0x6]   ;;  %s100_s18 = sld [smem:[#allocation4]] }
  0x63   :  { %1340 = vmatpush3.bf16.msra.mxu1 %v1484_v9  ;;  %s206_s17 = sshll.u32 %s1933_s15, 4  ;;  %s1934_s19 = smov [#allocation2 + $0x7]   ;;  %s2100_s17 = int_to_ptr.vmem [resolvable:$true] %s206_s17 }
  0x64   :  { %1341 = vmatprep.subr.bf16.mxu1 %v1925_v2  ;;  %s222_s21 = sshll.u32 %s1934_s19, 4  ;;  %s2091_s4 = sld [smem:[#allocation4 + $0x1]]  ;;  %s2102_s21 = int_to_ptr.vmem [resolvable:$true] %s222_s21 }
  0x65   :  { %1322 = vmatpush3.bf16.msra.mxu0 %v1476_v4  ;;  %s2093_s0 = sld [smem:[#allocation4 + $0x2]]  ;;  %s2095_s22 = sld [smem:[#allocation4 + $0x3]] }
  0x66   :  { %1323 = vmatprep.subr.bf16.mxu0 %v1925_v2  ;;  %s2104_s20 = sld [smem:[#allocation4 + $0x4]]  ;;  %s2106_s6 = sld [smem:[#allocation4 + $0x5]] }
  0x67   :  { %1342 = vmatpush3.bf16.msra.mxu1 %v1486_v12  ;;  %s2109_s24 = sld [smem:[#allocation4 + $0x6]]  ;;  %s2114_s5 = sld [smem:[#allocation4 + $0x7]] }
  0x68   :  { %1343 = vmatprep.subr.bf16.mxu1 %v1925_v2  ;;  %s1171_s23 = sshll.u32 %s100_s18, 4  ;;  %s2120_s15 = scalar_lea.hbm %s2334_s1, 4096 }
  0x69   :  { %1324 = vmatpush3.bf16.msra.mxu0 %v1477_v7  ;;  %s102_s29 = scalar_lea.hbm %s2334_s1, %s1171_s23 }
  0x6a   :  { %1325 = vmatprep.subr.bf16.mxu0 %v1925_v2  ;;  %s1652_s2 = scalar_lea.hbm %s102_s29, 16  ;;  %p1655_p10 = scmp.lt.u32.totalorder %s102_s29, %s2334_s1 }
  0x6b   :  { %1344 = vmatpush3.bf16.msra.mxu1 %v1488_v13  ;;  %p1653_p9 = scmp.ne.s32.totalorder %s102_s29, %s1652_s2  ;;  %p1656_p11 = scmp.lt.u32.totalorder %s2120_s15, %s1652_s2 }
  0x6c   :  { %1345 = vmatprep.subr.bf16.mxu1 %v1925_v2  ;;  %p1658_p13 = scmp.lt.u32.totalorder %s1652_s2, %s102_s29 }
  0x6d   :  { %1326 = vmatpush3.bf16.msra.mxu0 %v1478_v10  ;;  %p1657_p12 = por %p1656_p11, %p1655_p10 }
  0x6e   :  { %1327 = vmatprep.subr.bf16.mxu0 %v1925_v2 }
  0x6f   :  { %1346 = vmatpush3.bf16.msra.mxu1 %v1490_v15  ;;  %p1659_p0 = por %p1658_p13, %p1657_p12 }
  0x70   :  { %1347 = vmatprep.subr.bf16.mxu1 %v1925_v2 }
  0x71   :  { %1328 = vmatpush3.bf16.msra.mxu0 %v1479_v11  ;;  %p1660_p1 = pnand %p1659_p0, %p1653_p9 }
  0x72   :  { %1329 = vmatprep.subr.bf16.mxu0 %v1925_v2 }
  0x75   :  { %1330 = vmatpush3.bf16.msra.mxu0 %v1480_v14 }
  0x76   :  { %1331 = vmatprep.subr.bf16.mxu0 %v1925_v2 }
  0x77   :  { %1663 = shalt.err (!%p1660_p1)  }
  0x78   :  { %s1664_s23 = scalar_lea.vmem %s2076_s27, 16  ;;  %s2129_s25 = scalar_lea.vmem %s2076_s27, 128 }
  0x79   :  { %p1665_p2 = scmp.ne.s32.totalorder %s2076_s27, %s1664_s23  ;;  %p1669_p3 = scmp.lt.s32.totalorder %s2076_s27, %s2076_s27 }
  0x7a   :  { %p1670_p4 = scmp.lt.s32.totalorder %s2129_s25, %s1664_s23 }
  0x7c   :  { %p1671_p5 = por %p1670_p4, %p1669_p3 }
  0x7e   :  { %p1672_p6 = pnand %p1671_p5, %p1665_p2 }
  0x80   :  { %1675 = shalt.err (!%p1672_p6)  }
  0x81   :  { %113 = dma.hbm_to_vmem [thread:$0]  %s102_s29, 16, %s2076_s27, [#allocation3]  ;;  %1332 = vmatpush3.bf16.msra.mxu0 %v1481_v16  ;;  %v1483_v20 = vld [vmem:[#allocation11 + $0x80] sm:$0xff]   ;;  %1348 = vmatpush3.bf16.msra.mxu1 %v1492_v18  ;;  %v1494_v21 = vld [vmem:[#allocation11 + $0x70] sm:$0xff]  }
  0x82   :  { %s1173_s26 = sshll.u32 %s2091_s4, 4  ;;  %s1175_s2 = sshll.u32 %s2093_s0, 4  ;;  %1357 = vmatprep.subr.bf16.mxu0 %v1925_v2 }
  0x83   :  { %s116_s18 = scalar_lea.hbm %s2334_s1, %s1173_s26  ;;  %s2144_s13 = scalar_lea.hbm %s2334_s1, %s1175_s2 }
  0x84   :  { %s1676_s16 = scalar_lea.hbm %s116_s18, 16  ;;  %p1679_p8 = scmp.lt.u32.totalorder %s116_s18, %s2334_s1 }
  0x85   :  { %p1677_p7 = scmp.ne.s32.totalorder %s116_s18, %s1676_s16  ;;  %p1680_p9 = scmp.lt.u32.totalorder %s2120_s15, %s1676_s16 }
  0x86   :  { %p1682_p11 = scmp.lt.u32.totalorder %s1676_s16, %s116_s18 }
  0x87   :  { %p1681_p10 = por %p1680_p9, %p1679_p8 }
  0x89   :  { %p1683_p12 = por %p1682_p11, %p1681_p10 }
  0x8b   :  { %p1684_p13 = pnand %p1683_p12, %p1677_p7 }
  0x8d   :  { %1687 = shalt.err (!%p1684_p13)  }
  0x8e   :  { %s1688_s4 = scalar_lea.vmem %s2079_s30, 16  ;;  %p1693_p1 = scmp.lt.s32.totalorder %s2079_s30, %s2076_s27 }
  0x8f   :  { %p1689_p0 = scmp.ne.s32.totalorder %s2079_s30, %s1688_s4  ;;  %p1694_p2 = scmp.lt.s32.totalorder %s2129_s25, %s1688_s4 }
  0x91   :  { %p1695_p3 = por %p1694_p2, %p1693_p1 }
  0x93   :  { %p1696_p4 = pnand %p1695_p3, %p1689_p0 }
  0x95   :  { %1699 = shalt.err (!%p1696_p4)  }
  0x96   :  { %129 = dma.hbm_to_vmem [thread:$0]  %s116_s18, 16, %s2079_s30, [#allocation3 + $0x1]  ;;  %1334 = vmatmul.mubr.bf16.vlgmr.msra.gmra.mrb[0].mxu0 %v227_v19  ;;  %1349 = vmatprep.subr.bf16.mxu1 %v1925_v2 }
  0x97   :  { %s1700_s8 = scalar_lea.hbm %s2144_s13, 16  ;;  %p1703_p6 = scmp.lt.u32.totalorder %s2144_s13, %s2334_s1 }
  0x98   :  { %p1701_p5 = scmp.ne.s32.totalorder %s2144_s13, %s1700_s8  ;;  %p1704_p7 = scmp.lt.u32.totalorder %s2120_s15, %s1700_s8 }
  0x99   :  { %p1706_p9 = scmp.lt.u32.totalorder %s1700_s8, %s2144_s13 }
  0x9a   :  { %p1705_p8 = por %p1704_p7, %p1703_p6 }
  0x9c   :  { %p1707_p10 = por %p1706_p9, %p1705_p8 }
  0x9e   :  { %p1708_p11 = pnand %p1707_p10, %p1701_p5 }
  0xa0   :  { %1711 = shalt.err (!%p1708_p11)  }
  0xa1   :  { %s1712_s30 = scalar_lea.vmem %s2083_s11, 16  ;;  %p1717_p13 = scmp.lt.s32.totalorder %s2083_s11, %s2076_s27 }
  0xa2   :  { %p1713_p12 = scmp.ne.s32.totalorder %s2083_s11, %s1712_s30  ;;  %p1718_p0 = scmp.lt.s32.totalorder %s2129_s25, %s1712_s30 }
  0xa4   :  { %p1719_p1 = por %p1718_p0, %p1717_p13 }
  0xa6   :  { %p1720_p2 = pnand %p1719_p1, %p1713_p12 }
  0xa8   :  { %1723 = shalt.err (!%p1720_p2)  }
  0xa9   :  { %145 = dma.hbm_to_vmem [thread:$0]  %s2144_s13, 16, %s2083_s11, [#allocation3 + $0x2]  ;;  %1358 = vmatpush3.bf16.msra.mxu0 %v1483_v20  ;;  %v1485_v22 = vld [vmem:[#allocation11 + $0x88] sm:$0xff]   ;;  %1373 = vmatprep.mubr.msk.bf16.mxu0 %vm1926_vm0, %v1925_v2 }
  0xaa   :  { %s1177_s26 = sshll.u32 %s2095_s22, 4  ;;  %s1179_s2 = sshll.u32 %s2104_s20, 4  ;;  %1359 = vmatprep.subr.bf16.mxu0 %v1925_v2  ;;  %1350 = vmatpush3.bf16.msra.mxu1 %v1494_v21 }
  0xab   :  { %s148_s18 = scalar_lea.hbm %s2334_s1, %s1177_s26  ;;  %s2183_s29 = scalar_lea.hbm %s2334_s1, %s1179_s2 }
  0xac   :  { %s1724_s13 = scalar_lea.hbm %s148_s18, 16  ;;  %p1727_p4 = scmp.lt.u32.totalorder %s148_s18, %s2334_s1 }
  0xad   :  { %p1725_p3 = scmp.ne.s32.totalorder %s148_s18, %s1724_s13  ;;  %p1728_p5 = scmp.lt.u32.totalorder %s2120_s15, %s1724_s13 }
  0xae   :  { %p1730_p7 = scmp.lt.u32.totalorder %s1724_s13, %s148_s18 }
  0xaf   :  { %p1729_p6 = por %p1728_p5, %p1727_p4 }
  0xb1   :  { %p1731_p8 = por %p1730_p7, %p1729_p6 }
  0xb3   :  { %p1732_p9 = pnand %p1731_p8, %p1725_p3 }
  0xb5   :  { %1735 = shalt.err (!%p1732_p9)  }
  0xb6   :  { %s1736_s20 = scalar_lea.vmem %s2086_s28, 16  ;;  %p1741_p11 = scmp.lt.s32.totalorder %s2086_s28, %s2076_s27 }
  0xb7   :  { %p1737_p10 = scmp.ne.s32.totalorder %s2086_s28, %s1736_s20  ;;  %p1742_p12 = scmp.lt.s32.totalorder %s2129_s25, %s1736_s20 }
  0xb9   :  { %p1743_p13 = por %p1742_p12, %p1741_p11 }
  0xbb   :  { %p1744_p0 = pnand %p1743_p13, %p1737_p10 }
  0xbd   :  { %1747 = shalt.err (!%p1744_p0)  }
  0xbe   :  { %161 = dma.hbm_to_vmem [thread:$0]  %s148_s18, 16, %s2086_s28, [#allocation3 + $0x3]  ;;  %v1496_v23 = vld [vmem:[#allocation11 + $0x78] sm:$0xff]   ;;  %v2195_v24 = vld [vmem:[#allocation8 + $0x8] sm:$0xff]  ;;  %1351 = vmatprep.subr.bf16.mxu1 %v1925_v2 }
  0xbf   :  { %s1748_s4 = scalar_lea.hbm %s2183_s29, 16  ;;  %p1751_p2 = scmp.lt.u32.totalorder %s2183_s29, %s2334_s1 }
  0xc0   :  { %p1749_p1 = scmp.ne.s32.totalorder %s2183_s29, %s1748_s4  ;;  %p1752_p3 = scmp.lt.u32.totalorder %s2120_s15, %s1748_s4 }
  0xc1   :  { %p1754_p5 = scmp.lt.u32.totalorder %s1748_s4, %s2183_s29 }
  0xc2   :  { %p1753_p4 = por %p1752_p3, %p1751_p2 }
  0xc4   :  { %p1755_p6 = por %p1754_p5, %p1753_p4 }
  0xc6   :  { %p1756_p7 = pnand %p1755_p6, %p1749_p1 }
  0xc8   :  { %1759 = shalt.err (!%p1756_p7)  }
  0xc9   :  { %s1760_s28 = scalar_lea.vmem %s2088_s14, 16  ;;  %p1765_p9 = scmp.lt.s32.totalorder %s2088_s14, %s2076_s27 }
  0xca   :  { %p1761_p8 = scmp.ne.s32.totalorder %s2088_s14, %s1760_s28  ;;  %p1766_p10 = scmp.lt.s32.totalorder %s2129_s25, %s1760_s28 }
  0xcc   :  { %p1767_p11 = por %p1766_p10, %p1765_p9 }
  0xce   :  { %p1768_p12 = pnand %p1767_p11, %p1761_p8 }
  0xd0   :  { %1771 = shalt.err (!%p1768_p12)  }
  0xd1   :  { %177 = dma.hbm_to_vmem [thread:$0]  %s2183_s29, 16, %s2088_s14, [#allocation3 + $0x4]  ;;  %1360 = vmatpush3.bf16.msra.mxu0 %v1485_v22  ;;  %v1487_v25 = vld [vmem:[#allocation11 + $0x90] sm:$0xff]   ;;  %v341_v26 = vpack.c.bf16 %v2195_v24, %v2195_v24  ;;  %1352 = vmatpush3.bf16.msra.mxu1 %v1496_v23 }
  0xd2   :  { %s1181_s0 = sshll.u32 %s2106_s6, 4  ;;  %s1183_s30 = sshll.u32 %s2109_s24, 4  ;;  %1361 = vmatprep.subr.bf16.mxu0 %v1925_v2 }
  0xd3   :  { %s180_s12 = scalar_lea.hbm %s2334_s1, %s1181_s0  ;;  %s2222_s19 = scalar_lea.hbm %s2334_s1, %s1183_s30 }
  0xd4   :  { %s1772_s14 = scalar_lea.hbm %s180_s12, 16  ;;  %p1775_p0 = scmp.lt.u32.totalorder %s180_s12, %s2334_s1 }
  0xd5   :  { %p1773_p13 = scmp.ne.s32.totalorder %s180_s12, %s1772_s14  ;;  %p1776_p1 = scmp.lt.u32.totalorder %s2120_s15, %s1772_s14 }
  0xd6   :  { %p1778_p3 = scmp.lt.u32.totalorder %s1772_s14, %s180_s12 }
  0xd7   :  { %p1777_p2 = por %p1776_p1, %p1775_p0 }
  0xd9   :  { %p1779_p4 = por %p1778_p3, %p1777_p2 }
  0xdb   :  { %p1780_p5 = pnand %p1779_p4, %p1773_p13 }
  0xdd   :  { %1783 = shalt.err (!%p1780_p5)  }
  0xde   :  { %s1784_s24 = scalar_lea.vmem %s2097_s10, 16  ;;  %p1789_p7 = scmp.lt.s32.totalorder %s2097_s10, %s2076_s27 }
  0xdf   :  { %p1785_p6 = scmp.ne.s32.totalorder %s2097_s10, %s1784_s24  ;;  %p1790_p8 = scmp.lt.s32.totalorder %s2129_s25, %s1784_s24 }
  0xe1   :  { %p1791_p9 = por %p1790_p8, %p1789_p7 }
  0xe3   :  { %p1792_p10 = pnand %p1791_p9, %p1785_p6 }
  0xe5   :  { %1795 = shalt.err (!%p1792_p10)  }
  0xe6   :  { %193 = dma.hbm_to_vmem [thread:$0]  %s180_s12, 16, %s2097_s10, [#allocation3 + $0x5] }
  0xe7   :  { %s1796_s29 = scalar_lea.hbm %s2222_s19, 16  ;;  %p1799_p12 = scmp.lt.u32.totalorder %s2222_s19, %s2334_s1 }
  0xe8   :  { %p1797_p11 = scmp.ne.s32.totalorder %s2222_s19, %s1796_s29  ;;  %p1800_p13 = scmp.lt.u32.totalorder %s2120_s15, %s1796_s29 }
  0xe9   :  { %p1802_p1 = scmp.lt.u32.totalorder %s1796_s29, %s2222_s19 }
  0xea   :  { %p1801_p0 = por %p1800_p13, %p1799_p12 }
  0xec   :  { %p1803_p2 = por %p1802_p1, %p1801_p0 }
  0xee   :  { %p1804_p3 = pnand %p1803_p2, %p1797_p11 }
  0xf0   :  { %1807 = shalt.err (!%p1804_p3)  }
  0xf1   :  { %s1808_s22 = scalar_lea.vmem %s2100_s17, 16  ;;  %p1813_p5 = scmp.lt.s32.totalorder %s2100_s17, %s2076_s27 }
  0xf2   :  { %p1809_p4 = scmp.ne.s32.totalorder %s2100_s17, %s1808_s22  ;;  %p1814_p6 = scmp.lt.s32.totalorder %s2129_s25, %s1808_s22 }
  0xf4   :  { %p1815_p7 = por %p1814_p6, %p1813_p5 }
  0xf6   :  { %p1816_p8 = pnand %p1815_p7, %p1809_p4 }
  0xf8   :  { %1819 = shalt.err (!%p1816_p8)  }
  0xf9   :  { %209 = dma.hbm_to_vmem [thread:$0]  %s2222_s19, 16, %s2100_s17, [#allocation3 + $0x6]  ;;  %1362 = vmatpush3.bf16.msra.mxu0 %v1487_v25  ;;  %v1489_v27 = vld [vmem:[#allocation11 + $0x98] sm:$0xff]   ;;  %1354 = vmatmul.mubr.bf16.vlgmr.msra.gmra.mrb[0].mxu1 %v341_v26 }
  0xfa   :  { %s1185_s10 = sshll.u32 %s2114_s5, 4  ;;  %1363 = vmatprep.subr.bf16.mxu0 %v1925_v2 }
  0xfb   :  { %s212_s8 = scalar_lea.hbm %s2334_s1, %s1185_s10 }
  0xfc   :  { %s1820_s16 = scalar_lea.hbm %s212_s8, 16  ;;  %p1823_p10 = scmp.lt.u32.totalorder %s212_s8, %s2334_s1 }
  0xfd   :  { %p1821_p9 = scmp.ne.s32.totalorder %s212_s8, %s1820_s16  ;;  %p1824_p11 = scmp.lt.u32.totalorder %s2120_s15, %s1820_s16 }
  0xfe   :  { %p1826_p13 = scmp.lt.u32.totalorder %s1820_s16, %s212_s8 }
  0xff   :  { %p1825_p12 = por %p1824_p11, %p1823_p10 }
 0x101   :  { %p1827_p0 = por %p1826_p13, %p1825_p12 }
 0x103   :  { %p1828_p1 = pnand %p1827_p0, %p1821_p9 }
 0x105   :  { %1831 = shalt.err (!%p1828_p1)  }
 0x106   :  { %s1832_s17 = scalar_lea.vmem %s2102_s21, 16  ;;  %p1837_p3 = scmp.lt.s32.totalorder %s2102_s21, %s2076_s27 }
 0x107   :  { %p1833_p2 = scmp.ne.s32.totalorder %s2102_s21, %s1832_s17  ;;  %p1838_p4 = scmp.lt.s32.totalorder %s2129_s25, %s1832_s17 }
 0x109   :  { %p1839_p5 = por %p1838_p4, %p1837_p3 }
 0x10b   :  { %p1840_p6 = pnand %p1839_p5, %p1833_p2 }
 0x10d   :  { %1843 = shalt.err (!%p1840_p6)  }
 0x10e   :  { %225 = dma.hbm_to_vmem [thread:$0]  %s212_s8, 16, %s2102_s21, [#allocation3 + $0x7]  ;;  %1364 = vmatpush3.bf16.msra.mxu0 %v1489_v27  ;;  %v1491_v28 = vld [vmem:[#allocation11 + $0xa0] sm:$0xff]   ;;  %v1493_v29 = vld [vmem:[#allocation11 + $0xa8] sm:$0xff]   ;;  %v1495_v30 = vld [vmem:[#allocation11 + $0xb0] sm:$0xff]  }
 0x10f   :  { %1365 = vmatprep.subr.bf16.mxu0 %v1925_v2  ;;  %v1497_v31 = vld [vmem:[#allocation11 + $0xb8] sm:$0xff]  }
 0x110   :  { %v456_v32 = vld [vmem:[#allocation8 + $0x10] sm:$0xff] }
 0x111   :  { %v457_v33 = vpack.c.bf16 %v456_v32, %v456_v32 }
 0x112   :  { %1366 = vmatpush3.bf16.msra.mxu0 %v1491_v28 }
 0x113   :  { %1367 = vmatprep.subr.bf16.mxu0 %v1925_v2 }
 0x116   :  { %1368 = vmatpush3.bf16.msra.mxu0 %v1493_v29 }
 0x117   :  { %1369 = vmatprep.subr.bf16.mxu0 %v1925_v2 }
 0x11a   :  { %1370 = vmatpush3.bf16.msra.mxu0 %v1495_v30 }
 0x11b   :  { %1371 = vmatprep.subr.bf16.mxu0 %v1925_v2 }
 0x11e   :  { %1372 = vmatpush3.bf16.msra.mxu0 %v1497_v31 }
 0x121   :  { %1374 = vmatmul.mubr.bf16.vlgmr.msra.gmra.mrb[4].mxu0 %v457_v33 }
 0x122   :  { %1896 = dma.done.wait [#allocation3], 16 }
 0x123   :  { %1897 = vsyncadd [#allocation3], 4294967280 }
 0x124   :  { %1898 = dma.done.wait [#allocation3 + $0x1], 16 }
 0x125   :  { %1899 = vsyncadd [#allocation3 + $0x1], 4294967280 }
 0x126   :  { %1900 = dma.done.wait [#allocation3 + $0x2], 16 }
 0x127   :  { %1901 = vsyncadd [#allocation3 + $0x2], 4294967280 }
 0x128   :  { %1902 = dma.done.wait [#allocation3 + $0x3], 16 }
 0x129   :  { %1903 = vsyncadd [#allocation3 + $0x3], 4294967280 }
 0x12a   :  { %1904 = dma.done.wait [#allocation3 + $0x4], 16 }
 0x12b   :  { %1905 = vsyncadd [#allocation3 + $0x4], 4294967280 }
 0x12c   :  { %1906 = dma.done.wait [#allocation3 + $0x5], 16 }
 0x12d   :  { %1907 = vsyncadd [#allocation3 + $0x5], 4294967280 }
 0x12e   :  { %1908 = dma.done.wait [#allocation3 + $0x6], 16 }
 0x12f   :  { %1909 = vsyncadd [#allocation3 + $0x6], 4294967280 }
 0x130   :  { %1910 = dma.done.wait [#allocation3 + $0x7], 16 }
 0x131   :  { %1911 = vsyncadd [#allocation3 + $0x7], 4294967280  ;;  %1377 = vmatprep.subr.bf16.mxu0 %v1925_v2  ;;  %1393 = vmatprep.mubr.msk.bf16.mxu0 %vm1926_vm0, %v1925_v2  ;;  %v1498_v34 = vld [vmem:[#allocation9] sm:$0xff]   ;;  %v1499_v35 = vld [vmem:[#allocation9 + $0x8] sm:$0xff]   ;;  %v1935_v27 = vmov 0   ;;  %s1936_s1 = smov [#allocation15]  }
 0x132   :  { %1397 = vmatprep.subr.bf16.mxu1 %v1925_v2  ;;  %1413 = vmatprep.mubr.msk.bf16.mxu1 %vm1926_vm0, %v1925_v2  ;;  %v1500_v36 = vld [vmem:[#allocation9 + $0x10] sm:$0xff]   ;;  %v1506_v37 = vld [vmem:[#allocation9 + $0x40] sm:$0xff]   ;;  %v1501_v38 = vld [vmem:[#allocation9 + $0x18] sm:$0xff]   ;;  %s1081_s27 = sshll.u32 %s1936_s1, 4  ;;  %s1082_s27 = int_to_ptr.vmem [resolvable:$true] %s1081_s27 }
 0x133   :  { %1378 = vmatpush3.bf16.msra.mxu0 %v1498_v34  ;;  %1398 = vmatpush3.bf16.msra.mxu1 %v1506_v37  ;;  %v1507_v39 = vld [vmem:[#allocation9 + $0x48] sm:$0xff]   ;;  %v1502_v40 = vld [vmem:[#allocation9 + $0x20] sm:$0xff]   ;;  %v1508_v41 = vld [vmem:[#allocation9 + $0x50] sm:$0xff]   ;;  %s1844_s21 = scalar_lea.vmem %s1082_s27, 384  ;;  %p1849_p8 = scmp.lt.s32.totalorder %s1082_s27, %s1082_s27 }
 0x134   :  { %1379 = vmatprep.subr.bf16.mxu0 %v1925_v2  ;;  %1399 = vmatprep.subr.bf16.mxu1 %v1925_v2  ;;  %v1503_v42 = vld [vmem:[#allocation9 + $0x28] sm:$0xff]   ;;  %v1509_v43 = vld [vmem:[#allocation9 + $0x58] sm:$0xff]   ;;  %v1504_v44 = vld [vmem:[#allocation9 + $0x30] sm:$0xff]   ;;  %p1845_p7 = scmp.ne.s32.totalorder %s1082_s27, %s1844_s21  ;;  %p1850_p9 = scmp.lt.s32.totalorder %s1844_s21, %s1844_s21 }
 0x135   :  { %v1505_v45 = vld [vmem:[#allocation9 + $0x38] sm:$0xff]   ;;  %v588_v46 = vld [vmem:[#allocation2] sm:$0xff]  ;;  %v1511_v49 = vld [vmem:[#allocation9 + $0x68] sm:$0xff]  }
 0x136   :  { %v589_v47 = vpack.c.bf16 %v588_v46, %v588_v46  ;;  %v1510_v48 = vld [vmem:[#allocation9 + $0x60] sm:$0xff]   ;;  %v1512_v50 = vld [vmem:[#allocation9 + $0x70] sm:$0xff]   ;;  %v1513_v51 = vld [vmem:[#allocation9 + $0x78] sm:$0xff]   ;;  %p1851_p10 = por %p1850_p9, %p1849_p8 }
 0x137   :  { %1380 = vmatpush3.bf16.msra.mxu0 %v1499_v35  ;;  %1400 = vmatpush3.bf16.msra.mxu1 %v1507_v39  ;;  %v1514_v52 = vld [vmem:[#allocation9 + $0x80] sm:$0xff]   ;;  %v1515_v53 = vld [vmem:[#allocation9 + $0x88] sm:$0xff]   ;;  %v1516_v54 = vld [vmem:[#allocation9 + $0x90] sm:$0xff]  }
 0x138   :  { %1381 = vmatprep.subr.bf16.mxu0 %v1925_v2  ;;  %1401 = vmatprep.subr.bf16.mxu1 %v1925_v2  ;;  %v1517_v55 = vld [vmem:[#allocation9 + $0x98] sm:$0xff]   ;;  %v1518_v63 = vld [vmem:[#allocation9 + $0xa0] sm:$0xff]   ;;  %v1519_v1 = vld [vmem:[#allocation9 + $0xa8] sm:$0xff]   ;;  %p1852_p11 = pnand %p1851_p10, %p1845_p7 }
 0x139   :  { %v1520_v3 = vld [vmem:[#allocation9 + $0xb0] sm:$0xff]   ;;  %v1522_v4 = vld [vmem:[#allocation12] ss:$8 sps:$4 sm:$0xff]   ;;  %v1524_v7 = vld [vmem:[#allocation12 + $0x4] ss:$8 sps:$4 sm:$0xff]  }
 0x13a   :  { %v1527_v8 = vld [vmem:[#allocation12 + $0x14] ss:$8 sps:$4 sm:$0xff]   ;;  %v1525_v9 = vld [vmem:[#allocation12 + $0x10] ss:$8 sps:$4 sm:$0xff]   ;;  %v1530_v10 = vld [vmem:[#allocation12 + $0x24] ss:$8 sps:$4 sm:$0xff]  }
 0x13b   :  { %1382 = vmatpush3.bf16.msra.mxu0 %v1500_v36  ;;  %1402 = vmatpush3.bf16.msra.mxu1 %v1508_v41  ;;  %v1528_v11 = vld [vmem:[#allocation12 + $0x20] ss:$8 sps:$4 sm:$0xff]   ;;  %v1533_v12 = vld [vmem:[#allocation12 + $0x34] ss:$8 sps:$4 sm:$0xff]   ;;  %v1531_v13 = vld [vmem:[#allocation12 + $0x30] ss:$8 sps:$4 sm:$0xff]  }
 0x13c   :  { %1383 = vmatprep.subr.bf16.mxu0 %v1925_v2  ;;  %1403 = vmatprep.subr.bf16.mxu1 %v1925_v2  ;;  %v1536_v20 = vld [vmem:[#allocation12 + $0x44] ss:$8 sps:$4 sm:$0xff]   ;;  %v1534_v21 = vld [vmem:[#allocation12 + $0x40] ss:$8 sps:$4 sm:$0xff]   ;;  %v1539_v22 = vld [vmem:[#allocation12 + $0x54] ss:$8 sps:$4 sm:$0xff]  }
 0x13d   :  { %v1537_v23 = vld [vmem:[#allocation12 + $0x50] ss:$8 sps:$4 sm:$0xff]   ;;  %v1542_v24 = vld [vmem:[#allocation12 + $0x64] ss:$8 sps:$4 sm:$0xff]   ;;  %v1540_v25 = vld [vmem:[#allocation12 + $0x60] ss:$8 sps:$4 sm:$0xff]  }
 0x13e   :  { %v1543_v26 = vld [vmem:[#allocation12 + $0x70] ss:$8 sps:$4 sm:$0xff]  }
 0x13f   :  { %1384 = vmatpush3.bf16.msra.mxu0 %v1501_v38  ;;  %1404 = vmatpush3.bf16.msra.mxu1 %v1509_v43 }
 0x140   :  { %1385 = vmatprep.subr.bf16.mxu0 %v1925_v2  ;;  %1405 = vmatprep.subr.bf16.mxu1 %v1925_v2 }
 0x143   :  { %1386 = vmatpush3.bf16.msra.mxu0 %v1502_v40  ;;  %1406 = vmatpush3.bf16.msra.mxu1 %v1510_v48 }
 0x144   :  { %1387 = vmatprep.subr.bf16.mxu0 %v1925_v2  ;;  %1407 = vmatprep.subr.bf16.mxu1 %v1925_v2 }
 0x147   :  { %1388 = vmatpush3.bf16.msra.mxu0 %v1503_v42  ;;  %1408 = vmatpush3.bf16.msra.mxu1 %v1511_v49 }
 0x148   :  { %1389 = vmatprep.subr.bf16.mxu0 %v1925_v2  ;;  %1409 = vmatprep.subr.bf16.mxu1 %v1925_v2 }
 0x14b   :  { %1390 = vmatpush3.bf16.msra.mxu0 %v1504_v44  ;;  %1410 = vmatpush3.bf16.msra.mxu1 %v1512_v50 }
 0x14c   :  { %1391 = vmatprep.subr.bf16.mxu0 %v1925_v2  ;;  %1411 = vmatprep.subr.bf16.mxu1 %v1925_v2 }
 0x14f   :  { %1392 = vmatpush3.bf16.msra.mxu0 %v1505_v45  ;;  %1412 = vmatpush3.bf16.msra.mxu1 %v1513_v51 }
 0x150   :  { %1417 = vmatprep.subr.bf16.mxu0 %v1925_v2  ;;  %1023 = vmatprep.subr.bf16.mxu1 %v1524_v7 }
 0x152   :  { %1394 = vmatmul.mubr.bf16.vlgmr.msra.gmra.mrb[0].mxu0 %v589_v47 }
 0x153   :  { %1433 = vmatprep.mubr.msk.bf16.mxu0 %vm1926_vm0, %v1925_v2  ;;  %1418 = vmatpush3.bf16.msra.mxu0 %v1514_v52 }
 0x154   :  { %1419 = vmatprep.subr.bf16.mxu0 %v1925_v2 }
 0x157   :  { %1420 = vmatpush3.bf16.msra.mxu0 %v1515_v53 }
 0x158   :  { %1421 = vmatprep.subr.bf16.mxu0 %v1925_v2 }
 0x15b   :  { %1422 = vmatpush3.bf16.msra.mxu0 %v1516_v54 }
 0x15c   :  { %1423 = vmatprep.subr.bf16.mxu0 %v1925_v2 }
 0x15f   :  { %1424 = vmatpush3.bf16.msra.mxu0 %v1517_v55 }
 0x160   :  { %1425 = vmatprep.subr.bf16.mxu0 %v1925_v2 }
 0x163   :  { %1426 = vmatpush3.bf16.msra.mxu0 %v1518_v63 }
 0x164   :  { %1427 = vmatprep.subr.bf16.mxu0 %v1925_v2 }
 0x167   :  { %1428 = vmatpush3.bf16.msra.mxu0 %v1519_v1 }
 0x168   :  { %1429 = vmatprep.subr.bf16.mxu0 %v1925_v2 }
 0x16b   :  { %1430 = vmatpush3.bf16.msra.mxu0 %v1520_v3 }
 0x16c   :  { %1431 = vmatprep.subr.bf16.mxu0 %v1925_v2 }
 0x225   :  { %v688_v56 = vpop.f32.mrb[0].mxu0 }
 0x226   :  { %v1437_v57 = vadd.f32 %v2054_v0, %v688_v56  ;;  %v1395_v58 = vpop.f32.mrb[1].mxu0  ;;  %v1521_v0 = vld [vmem:[#allocation9 + $0xb8] sm:$0xff]  }
 0x227   :  { %v691_v59 = vpop.f32.mrb[2].mxu0  ;;  %1432 = vmatpush3.bf16.msra.mxu0 %v1521_v0 }
 0x228   :  { %1546 = vtanh.f32 %v1437_v57  ;;  %v1396_v60 = vpop.f32.mrb[3].mxu0 }
 0x232   :  { %v1547_v61 = vpop.eup %1546 }
 0x233   :  { %695 = vst [vmem:[#allocation15] sm:$0xff] %v1547_v61  ;;  %v696_v62 = vpack.c.bf16 %v1547_v61, %v1547_v61 }
 0x235   :  { %1414 = vmatmul.mubr.bf16.vlgmr.msra.gmra.mrb[0].mxu1 %v696_v62 }
 0x236   :  { %1024 = vmatpush1.bf16.msra.mxu1 %v1522_v4  ;;  %1055 = vmatprep.mubr.bf16.mxu1 %v1935_v27 }
 0x237   :  { %1025 = vmatprep.subr.bf16.mxu1 %v1527_v8 }
 0x23a   :  { %1026 = vmatpush1.bf16.msra.mxu1 %v1525_v9 }
 0x23b   :  { %1027 = vmatprep.subr.bf16.mxu1 %v1530_v10 }
 0x23e   :  { %1028 = vmatpush1.bf16.msra.mxu1 %v1528_v11 }
 0x23f   :  { %1029 = vmatprep.subr.bf16.mxu1 %v1533_v12 }
 0x242   :  { %1030 = vmatpush1.bf16.msra.mxu1 %v1531_v13 }
 0x243   :  { %1031 = vmatprep.subr.bf16.mxu1 %v1536_v20 }
 0x246   :  { %1032 = vmatpush1.bf16.msra.mxu1 %v1534_v21 }
 0x247   :  { %1033 = vmatprep.subr.bf16.mxu1 %v1539_v22 }
 0x24a   :  { %1034 = vmatpush1.bf16.msra.mxu1 %v1537_v23 }
 0x24b   :  { %1035 = vmatprep.subr.bf16.mxu1 %v1542_v24 }
 0x24e   :  { %1036 = vmatpush1.bf16.msra.mxu1 %v1540_v25 }
 0x308   :  { %v796_v14 = vpop.f32.mrb[0].mxu1 }
 0x309   :  { %v1438_v2 = vadd.f32 %v2067_v5, %v796_v14  ;;  %v1415_v15 = vpop.f32.mrb[1].mxu1  ;;  %v1545_v5 = vld [vmem:[#allocation12 + $0x74] ss:$8 sps:$4 sm:$0xff]  }
 0x30a   :  { %v799_v16 = vpop.f32.mrb[2].mxu1  ;;  %1037 = vmatprep.subr.bf16.mxu1 %v1545_v5 }
 0x30b   :  { %1548 = vtanh.f32 %v1438_v2  ;;  %v1416_v17 = vpop.f32.mrb[3].mxu1  ;;  %1038 = vmatpush1.bf16.msra.mxu1 %v1543_v26 }
 0x315   :  { %v1549_v18 = vpop.eup %1548 }
 0x316   :  { %804 = vst [vmem:[#allocation15 + $0x8] sm:$0xff] %v1549_v18  ;;  %v805_v19 = vpack.c.bf16 %v1549_v18, %v1549_v18 }
 0x318   :  { %1434 = vmatmul.mubr.bf16.vlgmr.msra.gmra.mrb[4].mxu0 %v805_v19 }
 0x3eb   :  { %v905_v28 = vpop.f32.mrb[4].mxu0 }
 0x3ec   :  { %v1439_v29 = vadd.f32 %v2072_v6, %v905_v28  ;;  %v1435_v30 = vpop.f32.mrb[5].mxu0 }
 0x3ed   :  { %v908_v31 = vpop.f32.mrb[6].mxu0 }
 0x3ee   :  { %1550 = vtanh.f32 %v1439_v29  ;;  %v1436_v32 = vpop.f32.mrb[7].mxu0 }
 0x3f8   :  { %v1551_v33 = vpop.eup %1550 }
 0x3f9   :  { %913 = vst [vmem:[#allocation15 + $0x10] sm:$0xff] %v1551_v33  ;;  %v914_v34 = vpack.c.bf16 %v1551_v33, %v1551_v33 }
 0x3fb   :  { %1056 = vmatmul.mubr.bf16.vlgmr.msra.gmra.mrb[4].mxu1 %v914_v34 }
 0x3fc   :  { %1855 = shalt.err (!%p1852_p11)
}
 0x3fd   :  { %s1856_s25 = scalar_lea.hbm %s2342_s9, 384 }
 0x3fe   :  { %p1857_p12 = scmp.ne.s32.totalorder %s2342_s9, %s1856_s25  ;;  %p1860_p13 = scmp.lt.u32.totalorder %s1856_s25, %s2342_s9 }
 0x400   :  { %p1862_p0 = pnand %p1860_p13, %p1857_p12 }
 0x402   :  { %1865 = shalt.err (!%p1862_p0)
}
 0x403   :  { %s2347_s3 = smov 8   ;;  %s2348_s18 = smov 128   ;;  %v933_v6 = vlaneseq  ;;  %v931_v37 = vld [vmem:[%s2340_s7] sm:$0x3] }
 0x404   :  { %1087 = dma.vmem_to_hbm [thread:$0]  %s1082_s27, 384, %s2342_s9, [#allocation16], %s2348_s18, %s2348_s18, %s2347_s3  }
 0x405   :  { %v934_v35 = vshrl.u32 %v933_v6, 7  ;;  %s1937_s24 = smov [#allocation14]  }
 0x406   :  { %s1072_s29 = sshll.u32 %s1937_s24, 4  ;;  %s1073_s29 = int_to_ptr.vmem [resolvable:$true] %s1072_s29 }
 0x407   :  { %v935_v36 = vsub.s32 0, %v934_v35  ;;  %v939_v38 = vsub.s32 1, %v934_v35  ;;  %s1866_s9 = scalar_lea.vmem %s1073_s29, 256  ;;  %p1871_p2 = scmp.lt.s32.totalorder %s1073_s29, %s1073_s29 }
 0x408   :  { %p1867_p1 = scmp.ne.s32.totalorder %s1073_s29, %s1866_s9  ;;  %p1872_p3 = scmp.lt.s32.totalorder %s1866_s9, %s1866_s9 }
 0x409   :  { %v936_v39 = vrot.slane %v931_v37, %v935_v36  ;;  %v940_v40 = vrot.slane %v931_v37, %v939_v38 }
 0x40a   :  { %p1873_p4 = por %p1872_p3, %p1871_p2 }
 0x40c   :  { %p1874_p5 = pnand %p1873_p4, %p1867_p1 }
 0x4ce   :  { %v1057_v41 = vpop.f32.mrb[4].mxu1 }
 0x4cf   :  { %v1058_v42 = vadd.f32 %v1057_v41, %v936_v39  ;;  %v1059_v43 = vpop.f32.mrb[5].mxu1 }
 0x4d0   :  { %v1060_v44 = vadd.f32 %v1059_v43, %v940_v40  ;;  %v1061_v45 = vpop.f32.mrb[6].mxu1 }
 0x4d1   :  { %1064 = vst [vmem:[#allocation14] sm:$0xff] %v1058_v42  ;;  %v1062_v46 = vpop.f32.mrb[7].mxu1 }
 0x4d2   :  { %1065 = vst [vmem:[#allocation14 + $0x8] sm:$0xff] %v1060_v44 }
 0x4d3   :  { %1877 = shalt.err (!%p1874_p5)
}
 0x4d4   :  { %s2349_s11 = sld [smem:[#allocation49_spill]] }
 0x4da   :  { %s1878_s22 = scalar_lea.hbm %s2349_s11, 256 }
 0x4db   :  { %p1879_p6 = scmp.ne.s32.totalorder %s2349_s11, %s1878_s22  ;;  %p1882_p7 = scmp.lt.u32.totalorder %s1878_s22, %s2349_s11 }
 0x4dd   :  { %p1884_p8 = pnand %p1882_p7, %p1879_p6 }
 0x4df   :  { %1887 = shalt.err (!%p1884_p8)
}
 0x4e0   :  { %1075 = dma.vmem_to_hbm [thread:$0]  %s1073_s29, 256, %s2349_s11, [#allocation6]  }
 0x4e1   :  { %1912 = dma.done.wait [#allocation6], 256  }
 0x4e2   :  { %1913 = vsyncadd [#allocation6], 4294967040 }
 0x4e3   :  { %1914 = dma.done.wait [#allocation16], 384  }
 0x4e4   :  { %1915 = vsyncadd [#allocation16], 4294966912 }
 0x4e5   :  { %1094 = vsyncpa [#allocation5], 1 }
 0x4e6   :  { %1095 = vsyncpa [#allocation10], 1 }
 0x4e7   :  { %1096 = vsyncpa [#allocation13], 1 }
 0x4e8   :  { %1097 = vsyncpa [#allocation6], 1 }
 0x4e9   :  { %1098 = vsyncpa [#allocation16], 1 }
 0x4ea   :  { %1099 = vsyncpa [#allocation7], 1 }
 0x4eb   :  { %1100 = vsyncmov [#allocation3] }
 0x4ee   :  { %s1101_s0 = vpop.sfrf %1100 }
 0x4ef   :  { %p1255_p9 = scmp.ne.s32.totalorder %s1101_s0, 0 }
 0x4f1   :  { %1105 = shalt.err (%p1255_p9)  }
 0x4f2   :  { %1107 = vsyncmov [#allocation3 + $0x1] }
 0x4f5   :  { %s1108_s17 = vpop.sfrf %1107 }
 0x4f6   :  { %p1256_p10 = scmp.ne.s32.totalorder %s1108_s17, 0 }
 0x4f8   :  { %1112 = shalt.err (%p1256_p10)  }
 0x4f9   :  { %1114 = vsyncmov [#allocation3 + $0x2] }
 0x4fc   :  { %s1115_s1 = vpop.sfrf %1114 }
 0x4fd   :  { %p1257_p11 = scmp.ne.s32.totalorder %s1115_s1, 0 }
 0x4ff   :  { %1119 = shalt.err (%p1257_p11)  }
 0x500   :  { %1121 = vsyncmov [#allocation3 + $0x3] }
 0x503   :  { %s1122_s27 = vpop.sfrf %1121 }
 0x504   :  { %p1258_p12 = scmp.ne.s32.totalorder %s1122_s27, 0 }
 0x506   :  { %1126 = shalt.err (%p1258_p12)  }
 0x507   :  { %1128 = vsyncmov [#allocation3 + $0x4] }
 0x50a   :  { %s1129_s21 = vpop.sfrf %1128 }
 0x50b   :  { %p1259_p13 = scmp.ne.s32.totalorder %s1129_s21, 0 }
 0x50d   :  { %1133 = shalt.err (%p1259_p13)  }
 0x50e   :  { %1135 = vsyncmov [#allocation3 + $0x5] }
 0x511   :  { %s1136_s5 = vpop.sfrf %1135 }
 0x512   :  { %p1260_p0 = scmp.ne.s32.totalorder %s1136_s5, 0 }
 0x514   :  { %1140 = shalt.err (%p1260_p0)  }
 0x515   :  { %1142 = vsyncmov [#allocation3 + $0x6] }
 0x518   :  { %s1143_s15 = vpop.sfrf %1142 }
 0x519   :  { %p1261_p1 = scmp.ne.s32.totalorder %s1143_s15, 0 }
 0x51b   :  { %1147 = shalt.err (%p1261_p1)  }
 0x51c   :  { %1149 = vsyncmov [#allocation3 + $0x7] }
 0x51f   :  { %s1150_s25 = vpop.sfrf %1149 }
 0x520   :  { %p1262_p2 = scmp.ne.s32.totalorder %s1150_s25, 0 }
 0x522   :  { %1154 = shalt.err (%p1262_p2)  }

</bundles_post_ra>
